<compile_context>
chip_gen: v5e
topology: v5e:2x2
jax: 0.10.0
libtpu: 0.0.40
codegen_flags: <defaults>
</compile_context>

<pallas_src>
import functools

import jax
import jax.numpy as jnp
from jax.experimental import pallas as pl
from jax.experimental.pallas import tpu as pltpu


# ----------------------------------------------------------------------------
# Kernel: one (batch_group, time_step) grid point = one GRU step + decoder.
# ----------------------------------------------------------------------------
def char_rnn_kernel(tok_ref,      # SMEM (T, B) int32  -- scalar-prefetched ids
                    emb_ref,      # VMEM (V, 1, Hp) f32     (resident)
                    h0_ref,       # VMEM (L, Bg, Hp) f32    (per batch group)
                    w_ref,        # VMEM (L, 2Hp, 4Hp) bf16 (resident) [r|z|ni|nh]
                    b_ref,        # VMEM (L, 1, 4Hp) f32    (resident)
                    wdec_ref,     # VMEM (Hp, Op) bf16      (resident)
                    bdec_ref,     # VMEM (1, Op) f32        (resident)
                    logits_ref,   # VMEM (1, Bg, Op) f32    (per (t, g) block)
                    h_ref,        # VMEM (L, Bg, Hp) f32    (resident along t)
                    x_scratch,    # VMEM (Bg, Hp) f32 scratch
                    *, n_layers, hp, bg):
    g = pl.program_id(0)   # batch group ("parallel")
    t = pl.program_id(1)   # time step   ("arbitrary")

    # New sequence for this batch group: load the initial hidden state.
    @pl.when(t == 0)
    def _():
        h_ref[...] = h0_ref[...]

    # In-kernel embedding gather: Bg dynamic row loads driven by SMEM scalars.
    for i in range(bg):
        tok = tok_ref[t, g * bg + i]                       # scalar from SMEM
        x_scratch[pl.ds(i, 1), :] = emb_ref[tok]           # (1, Hp) row load
    x = x_scratch[...]                                     # (Bg, Hp) f32

    # 3-layer GRU, one fused MXU matmul per layer (bf16 in, f32 accumulate).
    for layer in range(n_layers):
        h_prev = h_ref[layer]                              # (Bg, Hp) f32
        xh = jnp.concatenate([x, h_prev], axis=1).astype(jnp.bfloat16)  # (Bg,2Hp)
        gates = jnp.dot(xh, w_ref[layer],
                        preferred_element_type=jnp.float32) + b_ref[layer]  # (Bg,4Hp)
        # Gate blocks are padded to 128 lanes -> slices land on vreg boundaries.
        r = jax.nn.sigmoid(gates[:, 0 * hp:1 * hp])
        z = jax.nn.sigmoid(gates[:, 1 * hp:2 * hp])
        n = jnp.tanh(gates[:, 2 * hp:3 * hp] + r * gates[:, 3 * hp:4 * hp])
        h_new = (1.0 - z) * n + z * h_prev                 # PyTorch GRU update
        h_ref[layer] = h_new
        x = h_new

    # Decoder (lane-dense 128-wide output).
    logits_ref[0] = (jnp.dot(x.astype(jnp.bfloat16), wdec_ref[...],
                             preferred_element_type=jnp.float32)
                     + bdec_ref[...])


# ----------------------------------------------------------------------------
# Parameter packing: PyTorch layout -> fused, lane-padded, bf16 kernel layout.
# ----------------------------------------------------------------------------
def pack_params(params, *, hidden_size, hp=128, op=128):
    H = hidden_size
    V = params["embedding"].shape[0]
    L = params["w_ih"].shape[0]
    O = params["w_dec"].shape[0]
    assert hp >= H and op >= O and hp % 128 == 0 and op % 128 == 0
    f32 = jnp.float32

    emb = jnp.zeros((V, 1, hp), f32).at[:, 0, :H].set(params["embedding"])

    # Fused per-layer weight: rows [x | h] (2*hp), cols [r | z | n_ih | n_hh].
    w = jnp.zeros((L, 2 * hp, 4 * hp), f32)
    b = jnp.zeros((L, 1, 4 * hp), f32)
    for l in range(L):
        wi, wh = params["w_ih"][l], params["w_hh"][l]      # (3H, H), PyTorch
        bi, bh = params["b_ih"][l], params["b_hh"][l]      # (3H,)
        for gi in range(2):                                # r, z: fuse ih + hh
            sl = slice(gi * H, (gi + 1) * H)
            w = w.at[l, 0:H, gi * hp:gi * hp + H].set(wi[sl].T)
            w = w.at[l, hp:hp + H, gi * hp:gi * hp + H].set(wh[sl].T)
            b = b.at[l, 0, gi * hp:gi * hp + H].set(bi[sl] + bh[sl])
        sl = slice(2 * H, 3 * H)                           # n: keep parts split
        w = w.at[l, 0:H, 2 * hp:2 * hp + H].set(wi[sl].T)
        b = b.at[l, 0, 2 * hp:2 * hp + H].set(bi[sl])
        w = w.at[l, hp:hp + H, 3 * hp:3 * hp + H].set(wh[sl].T)
        b = b.at[l, 0, 3 * hp:3 * hp + H].set(bh[sl])

    wdec = jnp.zeros((hp, op), f32).at[:H, :O].set(params["w_dec"].T)
    bdec = jnp.zeros((1, op), f32).at[0, :O].set(params["b_dec"])

    return {
        "emb": emb,
        "w": w.astype(jnp.bfloat16),
        "b": b,
        "wdec": wdec.astype(jnp.bfloat16),
        "bdec": bdec,
        "meta": (H, O, hp, op, L, V),
    }


# ----------------------------------------------------------------------------
# Wrapper: whole sequence in one pallas_call.
# ----------------------------------------------------------------------------
def char_rnn_forward(tokens, hidden0, packed, *, batch_group=8):
    H, O, hp, op, L, V = packed["meta"]
    T, B = tokens.shape
    assert batch_group % 8 == 0 and B % batch_group == 0
    G, Bg = B // batch_group, batch_group

    h0_p = jnp.zeros((L, B, hp), jnp.float32).at[:, :, :H].set(hidden0)

    kernel = functools.partial(char_rnn_kernel, n_layers=L, hp=hp, bg=Bg)

    grid_spec = pltpu.PrefetchScalarGridSpec(
        num_scalar_prefetch=1,                      # token ids -> SMEM
        grid=(G, T),
        in_specs=[
            pl.BlockSpec((V, 1, hp), lambda g, t, tok: (0, 0, 0)),        # emb
            pl.BlockSpec((L, Bg, hp), lambda g, t, tok: (0, g, 0)),       # h0
            pl.BlockSpec((L, 2 * hp, 4 * hp), lambda g, t, tok: (0, 0, 0)),  # W
            pl.BlockSpec((L, 1, 4 * hp), lambda g, t, tok: (0, 0, 0)),       # b
            pl.BlockSpec((hp, op), lambda g, t, tok: (0, 0)),             # W_dec
            pl.BlockSpec((1, op), lambda g, t, tok: (0, 0)),              # b_dec
        ],
        out_specs=(
            pl.BlockSpec((1, Bg, op), lambda g, t, tok: (t, g, 0)),   # logits/step
            pl.BlockSpec((L, Bg, hp), lambda g, t, tok: (0, g, 0)),   # final hidden
        ),
        scratch_shapes=[pltpu.VMEM((Bg, hp), jnp.float32)],           # gathered x
    )

    logits_p, h_p = pl.pallas_call(
        kernel,
        out_shape=(
            jax.ShapeDtypeStruct((T, B, op), jnp.float32),
            jax.ShapeDtypeStruct((L, B, hp), jnp.float32),
        ),
        grid_spec=grid_spec,
        compiler_params=pltpu.CompilerParams(
            dimension_semantics=("parallel", "arbitrary")),
    )(tokens, packed["emb"], h0_p, packed["w"], packed["b"],
      packed["wdec"], packed["bdec"])

    return logits_p[:, :, :O], h_p[:, :, :H]


# ----------------------------------------------------------------------------
# PyTorch-layout init + pure-JAX f32 reference (module semantics, per step).
# ----------------------------------------------------------------------------
def init_params(key, vocab_size, hidden_size, output_size, n_layers):
    H, O, L, V = hidden_size, output_size, n_layers, vocab_size
    k = 1.0 / jnp.sqrt(jnp.float32(H))
    keys = jax.random.split(key, 7)
    u = lambda kk, shape: jax.random.uniform(kk, shape, jnp.float32, -k, k)
    return {
        "embedding": jax.random.normal(keys[0], (V, H), jnp.float32),
        "w_ih": u(keys[1], (L, 3 * H, H)),      # PyTorch weight_ih_l{k}
        "w_hh": u(keys[2], (L, 3 * H, H)),      # PyTorch weight_hh_l{k}
        "b_ih": u(keys[3], (L, 3 * H)),
        "b_hh": u(keys[4], (L, 3 * H)),
        "w_dec": u(keys[5], (O, H)),            # nn.Linear weight
        "b_dec": u(keys[6], (O,)),
    }


def char_rnn_reference(tokens, hidden, params, *, hidden_size, n_layers):
    """T applications of CharRNN.forward (GRU cell + decoder), pure f32 JAX."""
    H = hidden_size
    T = tokens.shape[0]
    h = hidden
    logits_all = []
    for t in range(T):
        x = params["embedding"][tokens[t]]
        new_h = []
        for l in range(n_layers):
            hl = h[l]
            gi = x @ params["w_ih"][l].T + params["b_ih"][l]
            gh = hl @ params["w_hh"][l].T + params["b_hh"][l]
            r = jax.nn.sigmoid(gi[:, :H] + gh[:, :H])
            z = jax.nn.sigmoid(gi[:, H:2 * H] + gh[:, H:2 * H])
            n = jnp.tanh(gi[:, 2 * H:] + r * gh[:, 2 * H:])
            h_new = (1.0 - z) * n + z * hl
            new_h.append(h_new)
            x = h_new
        h = jnp.stack(new_h, axis=0)
        logits_all.append(x @ params["w_dec"].T + params["b_dec"])
    return jnp.stack(logits_all, axis=0), h


if __name__ == "__main__":
    # Small shapes consistent with CharRNN: 3 GRU layers, hidden=32,
    # vocab=output=64, batch=16 (2 groups of 8 for the parallel axis), seq=8.
    # For real serving, use B >= 128 (multiple of 8) to actually load the MXU.
    B, H, V, O, L, T = 16, 32, 64, 64, 3, 8

    key = jax.random.PRNGKey(0)
    k_tok, k_par = jax.random.split(key)
    params = init_params(k_par, V, H, O, L)
    packed = pack_params(params, hidden_size=H)

    tokens = jax.random.randint(k_tok, (T, B), 0, V, dtype=jnp.int32)
    hidden0 = jnp.zeros((L, B, H), jnp.float32)          # CharRNN.init_hidden

    logits, hidden1 = char_rnn_forward(tokens, hidden0, packed, batch_group=8)
    jax.block_until_ready((logits, hidden1))

    ref_logits, ref_hidden = char_rnn_reference(tokens, hidden0, params,
                                                hidden_size=H, n_layers=L)
    assert logits.shape == (T, B, O) and hidden1.shape == (L, B, H)
    # bf16 matmuls with f32 accumulation => relaxed tolerance vs f32 reference.
    assert jnp.allclose(logits, ref_logits, atol=5e-2, rtol=5e-2), \
        float(jnp.max(jnp.abs(logits - ref_logits)))
    assert jnp.allclose(hidden1, ref_hidden, atol=5e-2, rtol=5e-2), \
        float(jnp.max(jnp.abs(hidden1 - ref_hidden)))

    print("KERNEL_OK")
</pallas_src>

<mosaic_0001>
module attributes {stable_mosaic.version = 11 : i64} {
  func.func @char_rnn_kernel(%arg0: i32, %arg1: i32, %arg2: memref<8x16xi32, #tpu.memory_space<smem>>, %arg3: memref<64x1x128xf32, #tpu.memory_space<vmem>>, %arg4: memref<3x8x128xf32, #tpu.memory_space<vmem>>, %arg5: memref<3x256x512xbf16, #tpu.memory_space<vmem>>, %arg6: memref<3x1x512xf32, #tpu.memory_space<vmem>>, %arg7: memref<128x128xbf16, #tpu.memory_space<vmem>>, %arg8: memref<1x128xf32, #tpu.memory_space<vmem>>, %arg9: memref<1x8x128xf32, #tpu.memory_space<vmem>>, %arg10: memref<3x8x128xf32, #tpu.memory_space<vmem>>, %arg11: memref<8x128xf32, #tpu.memory_space<vmem>>) attributes {dimension_semantics = [#tpu.dimension_semantics<parallel>, #tpu.dimension_semantics<arbitrary>], iteration_bounds = array<i64: 2, 8>, scalar_prefetch = 1 : i64, scratch_operands = 1 : i64, tpu.core_type = #tpu.core_type<tc>, window_params = [{pipeline_mode = #tpu.pipeline_mode<synchronous>, transform_indices = @transform_0, window_bounds = array<i64: 64, 1, 128>}, {transform_indices = @transform_1, window_bounds = array<i64: 3, 8, 128>}, {pipeline_mode = #tpu.pipeline_mode<synchronous>, transform_indices = @transform_2, window_bounds = array<i64: 3, 256, 512>}, {pipeline_mode = #tpu.pipeline_mode<synchronous>, transform_indices = @transform_3, window_bounds = array<i64: 3, 1, 512>}, {pipeline_mode = #tpu.pipeline_mode<synchronous>, transform_indices = @transform_4, window_bounds = array<i64: 128, 128>}, {pipeline_mode = #tpu.pipeline_mode<synchronous>, transform_indices = @transform_5, window_bounds = array<i64: 1, 128>}, {transform_indices = @transform_6, window_bounds = array<i64: 1, 8, 128>}, {transform_indices = @transform_7, window_bounds = array<i64: 3, 8, 128>}]} {
    %c0_i32 = arith.constant 0 : i32
    %0 = arith.cmpi eq, %arg1, %c0_i32 : i32
    %1 = arith.extui %0 : i1 to i32
    %c0_i32_0 = arith.constant 0 : i32
    %2 = arith.cmpi ne, %1, %c0_i32_0 : i32
    scf.if %2 {
      %c0_90 = arith.constant 0 : index
      %c0_91 = arith.constant 0 : index
      %c0_92 = arith.constant 0 : index
      %193 = vector.load %arg4[%c0_90, %c0_91, %c0_92] : memref<3x8x128xf32, #tpu.memory_space<vmem>>, vector<3x8x128xf32>
      %c0_93 = arith.constant 0 : index
      %c0_94 = arith.constant 0 : index
      %c0_95 = arith.constant 0 : index
      %194 = vector.load %arg10[%c0_93, %c0_94, %c0_95] : memref<3x8x128xf32, #tpu.memory_space<vmem>>, vector<3x8x128xf32>
      tpu.vector_store %arg10[%c0_93, %c0_94, %c0_95], %193 {strides = array<i32>} : memref<3x8x128xf32, #tpu.memory_space<vmem>>, vector<3x8x128xf32>,
    } else {
    }
    %c8_i32 = arith.constant 8 : i32
    %3 = arith.muli %arg0, %c8_i32 : i32
    %c0_i32_1 = arith.constant 0 : i32
    %4 = arith.addi %3, %c0_i32_1 : i32
    %5 = arith.index_cast %arg1 : i32 to index
    %6 = arith.index_cast %4 : i32 to index
    %7 = memref.load %arg2[%5, %6] : memref<8x16xi32, #tpu.memory_space<smem>>
    %8 = arith.index_cast %7 : i32 to index
    %c0 = arith.constant 0 : index
    %c0_2 = arith.constant 0 : index
    %9 = vector.load %arg3[%8, %c0, %c0_2] : memref<64x1x128xf32, #tpu.memory_space<vmem>>, vector<1x1x128xf32>
    %10 = vector.shape_cast %9 : vector<1x1x128xf32> to vector<1x128xf32>
    %c0_3 = arith.constant 0 : index
    %c0_4 = arith.constant 0 : index
    %11 = vector.load %arg11[%c0_3, %c0_4] : memref<8x128xf32, #tpu.memory_space<vmem>>, vector<1x128xf32>
    tpu.vector_store %arg11[%c0_3, %c0_4], %10 {strides = array<i32>} : memref<8x128xf32, #tpu.memory_space<vmem>>, vector<1x128xf32>,
    %c8_i32_5 = arith.constant 8 : i32
    %12 = arith.muli %arg0, %c8_i32_5 : i32
    %c1_i32 = arith.constant 1 : i32
    %13 = arith.addi %12, %c1_i32 : i32
    %14 = arith.index_cast %arg1 : i32 to index
    %15 = arith.index_cast %13 : i32 to index
    %16 = memref.load %arg2[%14, %15] : memref<8x16xi32, #tpu.memory_space<smem>>
    %17 = arith.index_cast %16 : i32 to index
    %c0_6 = arith.constant 0 : index
    %c0_7 = arith.constant 0 : index
    %18 = vector.load %arg3[%17, %c0_6, %c0_7] : memref<64x1x128xf32, #tpu.memory_space<vmem>>, vector<1x1x128xf32>
    %19 = vector.shape_cast %18 : vector<1x1x128xf32> to vector<1x128xf32>
    %c1 = arith.constant 1 : index
    %c0_8 = arith.constant 0 : index
    %20 = vector.load %arg11[%c1, %c0_8] : memref<8x128xf32, #tpu.memory_space<vmem>>, vector<1x128xf32>
    tpu.vector_store %arg11[%c1, %c0_8], %19 {strides = array<i32>} : memref<8x128xf32, #tpu.memory_space<vmem>>, vector<1x128xf32>,
    %c8_i32_9 = arith.constant 8 : i32
    %21 = arith.muli %arg0, %c8_i32_9 : i32
    %c2_i32 = arith.constant 2 : i32
    %22 = arith.addi %21, %c2_i32 : i32
    %23 = arith.index_cast %arg1 : i32 to index
    %24 = arith.index_cast %22 : i32 to index
    %25 = memref.load %arg2[%23, %24] : memref<8x16xi32, #tpu.memory_space<smem>>
    %26 = arith.index_cast %25 : i32 to index
    %c0_10 = arith.constant 0 : index
    %c0_11 = arith.constant 0 : index
    %27 = vector.load %arg3[%26, %c0_10, %c0_11] : memref<64x1x128xf32, #tpu.memory_space<vmem>>, vector<1x1x128xf32>
    %28 = vector.shape_cast %27 : vector<1x1x128xf32> to vector<1x128xf32>
    %c2 = arith.constant 2 : index
    %c0_12 = arith.constant 0 : index
    %29 = vector.load %arg11[%c2, %c0_12] : memref<8x128xf32, #tpu.memory_space<vmem>>, vector<1x128xf32>
    tpu.vector_store %arg11[%c2, %c0_12], %28 {strides = array<i32>} : memref<8x128xf32, #tpu.memory_space<vmem>>, vector<1x128xf32>,
    %c8_i32_13 = arith.constant 8 : i32
    %30 = arith.muli %arg0, %c8_i32_13 : i32
    %c3_i32 = arith.constant 3 : i32
    %31 = arith.addi %30, %c3_i32 : i32
    %32 = arith.index_cast %arg1 : i32 to index
    %33 = arith.index_cast %31 : i32 to index
    %34 = memref.load %arg2[%32, %33] : memref<8x16xi32, #tpu.memory_space<smem>>
    %35 = arith.index_cast %34 : i32 to index
    %c0_14 = arith.constant 0 : index
    %c0_15 = arith.constant 0 : index
    %36 = vector.load %arg3[%35, %c0_14, %c0_15] : memref<64x1x128xf32, #tpu.memory_space<vmem>>, vector<1x1x128xf32>
    %37 = vector.shape_cast %36 : vector<1x1x128xf32> to vector<1x128xf32>
    %c3 = arith.constant 3 : index
    %c0_16 = arith.constant 0 : index
    %38 = vector.load %arg11[%c3, %c0_16] : memref<8x128xf32, #tpu.memory_space<vmem>>, vector<1x128xf32>
    tpu.vector_store %arg11[%c3, %c0_16], %37 {strides = array<i32>} : memref<8x128xf32, #tpu.memory_space<vmem>>, vector<1x128xf32>,
    %c8_i32_17 = arith.constant 8 : i32
    %39 = arith.muli %arg0, %c8_i32_17 : i32
    %c4_i32 = arith.constant 4 : i32
    %40 = arith.addi %39, %c4_i32 : i32
    %41 = arith.index_cast %arg1 : i32 to index
    %42 = arith.index_cast %40 : i32 to index
    %43 = memref.load %arg2[%41, %42] : memref<8x16xi32, #tpu.memory_space<smem>>
    %44 = arith.index_cast %43 : i32 to index
    %c0_18 = arith.constant 0 : index
    %c0_19 = arith.constant 0 : index
    %45 = vector.load %arg3[%44, %c0_18, %c0_19] : memref<64x1x128xf32, #tpu.memory_space<vmem>>, vector<1x1x128xf32>
    %46 = vector.shape_cast %45 : vector<1x1x128xf32> to vector<1x128xf32>
    %c4 = arith.constant 4 : index
    %c0_20 = arith.constant 0 : index
    %47 = vector.load %arg11[%c4, %c0_20] : memref<8x128xf32, #tpu.memory_space<vmem>>, vector<1x128xf32>
    tpu.vector_store %arg11[%c4, %c0_20], %46 {strides = array<i32>} : memref<8x128xf32, #tpu.memory_space<vmem>>, vector<1x128xf32>,
    %c8_i32_21 = arith.constant 8 : i32
    %48 = arith.muli %arg0, %c8_i32_21 : i32
    %c5_i32 = arith.constant 5 : i32
    %49 = arith.addi %48, %c5_i32 : i32
    %50 = arith.index_cast %arg1 : i32 to index
    %51 = arith.index_cast %49 : i32 to index
    %52 = memref.load %arg2[%50, %51] : memref<8x16xi32, #tpu.memory_space<smem>>
    %53 = arith.index_cast %52 : i32 to index
    %c0_22 = arith.constant 0 : index
    %c0_23 = arith.constant 0 : index
    %54 = vector.load %arg3[%53, %c0_22, %c0_23] : memref<64x1x128xf32, #tpu.memory_space<vmem>>, vector<1x1x128xf32>
    %55 = vector.shape_cast %54 : vector<1x1x128xf32> to vector<1x128xf32>
    %c5 = arith.constant 5 : index
    %c0_24 = arith.constant 0 : index
    %56 = vector.load %arg11[%c5, %c0_24] : memref<8x128xf32, #tpu.memory_space<vmem>>, vector<1x128xf32>
    tpu.vector_store %arg11[%c5, %c0_24], %55 {strides = array<i32>} : memref<8x128xf32, #tpu.memory_space<vmem>>, vector<1x128xf32>,
    %c8_i32_25 = arith.constant 8 : i32
    %57 = arith.muli %arg0, %c8_i32_25 : i32
    %c6_i32 = arith.constant 6 : i32
    %58 = arith.addi %57, %c6_i32 : i32
    %59 = arith.index_cast %arg1 : i32 to index
    %60 = arith.index_cast %58 : i32 to index
    %61 = memref.load %arg2[%59, %60] : memref<8x16xi32, #tpu.memory_space<smem>>
    %62 = arith.index_cast %61 : i32 to index
    %c0_26 = arith.constant 0 : index
    %c0_27 = arith.constant 0 : index
    %63 = vector.load %arg3[%62, %c0_26, %c0_27] : memref<64x1x128xf32, #tpu.memory_space<vmem>>, vector<1x1x128xf32>
    %64 = vector.shape_cast %63 : vector<1x1x128xf32> to vector<1x128xf32>
    %c6 = arith.constant 6 : index
    %c0_28 = arith.constant 0 : index
    %65 = vector.load %arg11[%c6, %c0_28] : memref<8x128xf32, #tpu.memory_space<vmem>>, vector<1x128xf32>
    tpu.vector_store %arg11[%c6, %c0_28], %64 {strides = array<i32>} : memref<8x128xf32, #tpu.memory_space<vmem>>, vector<1x128xf32>,
    %c8_i32_29 = arith.constant 8 : i32
    %66 = arith.muli %arg0, %c8_i32_29 : i32
    %c7_i32 = arith.constant 7 : i32
    %67 = arith.addi %66, %c7_i32 : i32
    %68 = arith.index_cast %arg1 : i32 to index
    %69 = arith.index_cast %67 : i32 to index
    %70 = memref.load %arg2[%68, %69] : memref<8x16xi32, #tpu.memory_space<smem>>
    %71 = arith.index_cast %70 : i32 to index
    %c0_30 = arith.constant 0 : index
    %c0_31 = arith.constant 0 : index
    %72 = vector.load %arg3[%71, %c0_30, %c0_31] : memref<64x1x128xf32, #tpu.memory_space<vmem>>, vector<1x1x128xf32>
    %73 = vector.shape_cast %72 : vector<1x1x128xf32> to vector<1x128xf32>
    %c7 = arith.constant 7 : index
    %c0_32 = arith.constant 0 : index
    %74 = vector.load %arg11[%c7, %c0_32] : memref<8x128xf32, #tpu.memory_space<vmem>>, vector<1x128xf32>
    tpu.vector_store %arg11[%c7, %c0_32], %73 {strides = array<i32>} : memref<8x128xf32, #tpu.memory_space<vmem>>, vector<1x128xf32>,
    %c0_33 = arith.constant 0 : index
    %c0_34 = arith.constant 0 : index
    %75 = vector.load %arg11[%c0_33, %c0_34] : memref<8x128xf32, #tpu.memory_space<vmem>>, vector<8x128xf32>
    %c0_35 = arith.constant 0 : index
    %c0_36 = arith.constant 0 : index
    %c0_37 = arith.constant 0 : index
    %76 = vector.load %arg10[%c0_35, %c0_36, %c0_37] : memref<3x8x128xf32, #tpu.memory_space<vmem>>, vector<1x8x128xf32>
    %77 = vector.shape_cast %76 : vector<1x8x128xf32> to vector<8x128xf32>
    %78 = tpu.concatenate %75, %77 in 1 : vector<8x128xf32>, vector<8x128xf32> -> vector<8x256xf32>
    %79 = arith.truncf %78 : vector<8x256xf32> to vector<8x256xbf16>
    %c0_38 = arith.constant 0 : index
    %c0_39 = arith.constant 0 : index
    %c0_40 = arith.constant 0 : index
    %80 = vector.load %arg5[%c0_38, %c0_39, %c0_40] : memref<3x256x512xbf16, #tpu.memory_space<vmem>>, vector<1x256x512xbf16>
    %81 = vector.shape_cast %80 : vector<1x256x512xbf16> to vector<256x512xbf16>
    %cst = arith.constant dense<0.000000e+00> : vector<8x512xf32>
    %82 = tpu.matmul %79, %81, %cst {dimension_numbers = #tpu.dot_dimension_numbers<[1], [0], [0], [1], [0, 0, 1, 1], [], []>} : vector<8x256xbf16>, vector<256x512xbf16>, vector<8x512xf32> -> vector<8x512xf32>
    %c0_41 = arith.constant 0 : index
    %c0_42 = arith.constant 0 : index
    %c0_43 = arith.constant 0 : index
    %83 = vector.load %arg6[%c0_41, %c0_42, %c0_43] : memref<3x1x512xf32, #tpu.memory_space<vmem>>, vector<1x1x512xf32>
    %84 = vector.shape_cast %83 : vector<1x1x512xf32> to vector<1x512xf32>
    %85 = vector.broadcast %84 : vector<1x512xf32> to vector<8x512xf32>
    %86 = arith.addf %82, %85 : vector<8x512xf32>
    %87 = vector.extract_strided_slice %86 {offsets = [0, 0], sizes = [8, 128], strides = [1, 1]} : vector<8x512xf32> to vector<8x128xf32>
    %88 = arith.negf %87 : vector<8x128xf32>
    %89 = math.exp %88 : vector<8x128xf32>
    %cst_44 = arith.constant 1.000000e+00 : f32
    %90 = vector.broadcast %cst_44 : f32 to vector<8x128xf32>
    %91 = arith.addf %90, %89 : vector<8x128xf32>
    %92 = arith.divf %90, %91 : vector<8x128xf32>
    %93 = vector.extract_strided_slice %86 {offsets = [0, 128], sizes = [8, 128], strides = [1, 1]} : vector<8x512xf32> to vector<8x128xf32>
    %94 = arith.negf %93 : vector<8x128xf32>
    %95 = math.exp %94 : vector<8x128xf32>
    %cst_45 = arith.constant 1.000000e+00 : f32
    %96 = vector.broadcast %cst_45 : f32 to vector<8x128xf32>
    %97 = arith.addf %96, %95 : vector<8x128xf32>
    %98 = arith.divf %96, %97 : vector<8x128xf32>
    %99 = vector.extract_strided_slice %86 {offsets = [0, 256], sizes = [8, 128], strides = [1, 1]} : vector<8x512xf32> to vector<8x128xf32>
    %100 = vector.extract_strided_slice %86 {offsets = [0, 384], sizes = [8, 128], strides = [1, 1]} : vector<8x512xf32> to vector<8x128xf32>
    %101 = arith.mulf %92, %100 : vector<8x128xf32>
    %102 = arith.addf %99, %101 : vector<8x128xf32>
    %103 = math.tanh %102 : vector<8x128xf32>
    %cst_46 = arith.constant 1.000000e+00 : f32
    %104 = vector.broadcast %cst_46 : f32 to vector<8x128xf32>
    %105 = arith.subf %104, %98 : vector<8x128xf32>
    %106 = arith.mulf %105, %103 : vector<8x128xf32>
    %107 = arith.mulf %98, %77 : vector<8x128xf32>
    %108 = arith.addf %106, %107 : vector<8x128xf32>
    %c0_47 = arith.constant 0 : index
    %c0_48 = arith.constant 0 : index
    %c0_49 = arith.constant 0 : index
    %109 = vector.load %arg10[%c0_47, %c0_48, %c0_49] : memref<3x8x128xf32, #tpu.memory_space<vmem>>, vector<1x8x128xf32>
    %110 = vector.shape_cast %109 : vector<1x8x128xf32> to vector<8x128xf32>
    %111 = vector.shape_cast %108 : vector<8x128xf32> to vector<1x8x128xf32>
    tpu.vector_store %arg10[%c0_47, %c0_48, %c0_49], %111 {strides = array<i32>} : memref<3x8x128xf32, #tpu.memory_space<vmem>>, vector<1x8x128xf32>,
    %c1_50 = arith.constant 1 : index
    %c0_51 = arith.constant 0 : index
    %c0_52 = arith.constant 0 : index
    %112 = vector.load %arg10[%c1_50, %c0_51, %c0_52] : memref<3x8x128xf32, #tpu.memory_space<vmem>>, vector<1x8x128xf32>
    %113 = vector.shape_cast %112 : vector<1x8x128xf32> to vector<8x128xf32>
    %114 = tpu.concatenate %108, %113 in 1 : vector<8x128xf32>, vector<8x128xf32> -> vector<8x256xf32>
    %115 = arith.truncf %114 : vector<8x256xf32> to vector<8x256xbf16>
    %c1_53 = arith.constant 1 : index
    %c0_54 = arith.constant 0 : index
    %c0_55 = arith.constant 0 : index
    %116 = vector.load %arg5[%c1_53, %c0_54, %c0_55] : memref<3x256x512xbf16, #tpu.memory_space<vmem>>, vector<1x256x512xbf16>
    %117 = vector.shape_cast %116 : vector<1x256x512xbf16> to vector<256x512xbf16>
    %cst_56 = arith.constant dense<0.000000e+00> : vector<8x512xf32>
    %118 = tpu.matmul %115, %117, %cst_56 {dimension_numbers = #tpu.dot_dimension_numbers<[1], [0], [0], [1], [0, 0, 1, 1], [], []>} : vector<8x256xbf16>, vector<256x512xbf16>, vector<8x512xf32> -> vector<8x512xf32>
    %c1_57 = arith.constant 1 : index
    %c0_58 = arith.constant 0 : index
    %c0_59 = arith.constant 0 : index
    %119 = vector.load %arg6[%c1_57, %c0_58, %c0_59] : memref<3x1x512xf32, #tpu.memory_space<vmem>>, vector<1x1x512xf32>
    %120 = vector.shape_cast %119 : vector<1x1x512xf32> to vector<1x512xf32>
    %121 = vector.broadcast %120 : vector<1x512xf32> to vector<8x512xf32>
    %122 = arith.addf %118, %121 : vector<8x512xf32>
    %123 = vector.extract_strided_slice %122 {offsets = [0, 0], sizes = [8, 128], strides = [1, 1]} : vector<8x512xf32> to vector<8x128xf32>
    %124 = arith.negf %123 : vector<8x128xf32>
    %125 = math.exp %124 : vector<8x128xf32>
    %cst_60 = arith.constant 1.000000e+00 : f32
    %126 = vector.broadcast %cst_60 : f32 to vector<8x128xf32>
    %127 = arith.addf %126, %125 : vector<8x128xf32>
    %128 = arith.divf %126, %127 : vector<8x128xf32>
    %129 = vector.extract_strided_slice %122 {offsets = [0, 128], sizes = [8, 128], strides = [1, 1]} : vector<8x512xf32> to vector<8x128xf32>
    %130 = arith.negf %129 : vector<8x128xf32>
    %131 = math.exp %130 : vector<8x128xf32>
    %cst_61 = arith.constant 1.000000e+00 : f32
    %132 = vector.broadcast %cst_61 : f32 to vector<8x128xf32>
    %133 = arith.addf %132, %131 : vector<8x128xf32>
    %134 = arith.divf %132, %133 : vector<8x128xf32>
    %135 = vector.extract_strided_slice %122 {offsets = [0, 256], sizes = [8, 128], strides = [1, 1]} : vector<8x512xf32> to vector<8x128xf32>
    %136 = vector.extract_strided_slice %122 {offsets = [0, 384], sizes = [8, 128], strides = [1, 1]} : vector<8x512xf32> to vector<8x128xf32>
    %137 = arith.mulf %128, %136 : vector<8x128xf32>
    %138 = arith.addf %135, %137 : vector<8x128xf32>
    %139 = math.tanh %138 : vector<8x128xf32>
    %cst_62 = arith.constant 1.000000e+00 : f32
    %140 = vector.broadcast %cst_62 : f32 to vector<8x128xf32>
    %141 = arith.subf %140, %134 : vector<8x128xf32>
    %142 = arith.mulf %141, %139 : vector<8x128xf32>
    %143 = arith.mulf %134, %113 : vector<8x128xf32>
    %144 = arith.addf %142, %143 : vector<8x128xf32>
    %c1_63 = arith.constant 1 : index
    %c0_64 = arith.constant 0 : index
    %c0_65 = arith.constant 0 : index
    %145 = vector.load %arg10[%c1_63, %c0_64, %c0_65] : memref<3x8x128xf32, #tpu.memory_space<vmem>>, vector<1x8x128xf32>
    %146 = vector.shape_cast %145 : vector<1x8x128xf32> to vector<8x128xf32>
    %147 = vector.shape_cast %144 : vector<8x128xf32> to vector<1x8x128xf32>
    tpu.vector_store %arg10[%c1_63, %c0_64, %c0_65], %147 {strides = array<i32>} : memref<3x8x128xf32, #tpu.memory_space<vmem>>, vector<1x8x128xf32>,
    %c2_66 = arith.constant 2 : index
    %c0_67 = arith.constant 0 : index
    %c0_68 = arith.constant 0 : index
    %148 = vector.load %arg10[%c2_66, %c0_67, %c0_68] : memref<3x8x128xf32, #tpu.memory_space<vmem>>, vector<1x8x128xf32>
    %149 = vector.shape_cast %148 : vector<1x8x128xf32> to vector<8x128xf32>
    %150 = tpu.concatenate %144, %149 in 1 : vector<8x128xf32>, vector<8x128xf32> -> vector<8x256xf32>
    %151 = arith.truncf %150 : vector<8x256xf32> to vector<8x256xbf16>
    %c2_69 = arith.constant 2 : index
    %c0_70 = arith.constant 0 : index
    %c0_71 = arith.constant 0 : index
    %152 = vector.load %arg5[%c2_69, %c0_70, %c0_71] : memref<3x256x512xbf16, #tpu.memory_space<vmem>>, vector<1x256x512xbf16>
    %153 = vector.shape_cast %152 : vector<1x256x512xbf16> to vector<256x512xbf16>
    %cst_72 = arith.constant dense<0.000000e+00> : vector<8x512xf32>
    %154 = tpu.matmul %151, %153, %cst_72 {dimension_numbers = #tpu.dot_dimension_numbers<[1], [0], [0], [1], [0, 0, 1, 1], [], []>} : vector<8x256xbf16>, vector<256x512xbf16>, vector<8x512xf32> -> vector<8x512xf32>
    %c2_73 = arith.constant 2 : index
    %c0_74 = arith.constant 0 : index
    %c0_75 = arith.constant 0 : index
    %155 = vector.load %arg6[%c2_73, %c0_74, %c0_75] : memref<3x1x512xf32, #tpu.memory_space<vmem>>, vector<1x1x512xf32>
    %156 = vector.shape_cast %155 : vector<1x1x512xf32> to vector<1x512xf32>
    %157 = vector.broadcast %156 : vector<1x512xf32> to vector<8x512xf32>
    %158 = arith.addf %154, %157 : vector<8x512xf32>
    %159 = vector.extract_strided_slice %158 {offsets = [0, 0], sizes = [8, 128], strides = [1, 1]} : vector<8x512xf32> to vector<8x128xf32>
    %160 = arith.negf %159 : vector<8x128xf32>
    %161 = math.exp %160 : vector<8x128xf32>
    %cst_76 = arith.constant 1.000000e+00 : f32
    %162 = vector.broadcast %cst_76 : f32 to vector<8x128xf32>
    %163 = arith.addf %162, %161 : vector<8x128xf32>
    %164 = arith.divf %162, %163 : vector<8x128xf32>
    %165 = vector.extract_strided_slice %158 {offsets = [0, 128], sizes = [8, 128], strides = [1, 1]} : vector<8x512xf32> to vector<8x128xf32>
    %166 = arith.negf %165 : vector<8x128xf32>
    %167 = math.exp %166 : vector<8x128xf32>
    %cst_77 = arith.constant 1.000000e+00 : f32
    %168 = vector.broadcast %cst_77 : f32 to vector<8x128xf32>
    %169 = arith.addf %168, %167 : vector<8x128xf32>
    %170 = arith.divf %168, %169 : vector<8x128xf32>
    %171 = vector.extract_strided_slice %158 {offsets = [0, 256], sizes = [8, 128], strides = [1, 1]} : vector<8x512xf32> to vector<8x128xf32>
    %172 = vector.extract_strided_slice %158 {offsets = [0, 384], sizes = [8, 128], strides = [1, 1]} : vector<8x512xf32> to vector<8x128xf32>
    %173 = arith.mulf %164, %172 : vector<8x128xf32>
    %174 = arith.addf %171, %173 : vector<8x128xf32>
    %175 = math.tanh %174 : vector<8x128xf32>
    %cst_78 = arith.constant 1.000000e+00 : f32
    %176 = vector.broadcast %cst_78 : f32 to vector<8x128xf32>
    %177 = arith.subf %176, %170 : vector<8x128xf32>
    %178 = arith.mulf %177, %175 : vector<8x128xf32>
    %179 = arith.mulf %170, %149 : vector<8x128xf32>
    %180 = arith.addf %178, %179 : vector<8x128xf32>
    %c2_79 = arith.constant 2 : index
    %c0_80 = arith.constant 0 : index
    %c0_81 = arith.constant 0 : index
    %181 = vector.load %arg10[%c2_79, %c0_80, %c0_81] : memref<3x8x128xf32, #tpu.memory_space<vmem>>, vector<1x8x128xf32>
    %182 = vector.shape_cast %181 : vector<1x8x128xf32> to vector<8x128xf32>
    %183 = vector.shape_cast %180 : vector<8x128xf32> to vector<1x8x128xf32>
    tpu.vector_store %arg10[%c2_79, %c0_80, %c0_81], %183 {strides = array<i32>} : memref<3x8x128xf32, #tpu.memory_space<vmem>>, vector<1x8x128xf32>,
    %184 = arith.truncf %180 : vector<8x128xf32> to vector<8x128xbf16>
    %c0_82 = arith.constant 0 : index
    %c0_83 = arith.constant 0 : index
    %185 = vector.load %arg7[%c0_82, %c0_83] : memref<128x128xbf16, #tpu.memory_space<vmem>>, vector<128x128xbf16>
    %cst_84 = arith.constant dense<0.000000e+00> : vector<8x128xf32>
    %186 = tpu.matmul %184, %185, %cst_84 {dimension_numbers = #tpu.dot_dimension_numbers<[1], [0], [0], [1], [0, 0, 1, 1], [], []>} : vector<8x128xbf16>, vector<128x128xbf16>, vector<8x128xf32> -> vector<8x128xf32>
    %c0_85 = arith.constant 0 : index
    %c0_86 = arith.constant 0 : index
    %187 = vector.load %arg8[%c0_85, %c0_86] : memref<1x128xf32, #tpu.memory_space<vmem>>, vector<1x128xf32>
    %188 = vector.broadcast %187 : vector<1x128xf32> to vector<8x128xf32>
    %189 = arith.addf %186, %188 : vector<8x128xf32>
    %c0_87 = arith.constant 0 : index
    %c0_88 = arith.constant 0 : index
    %c0_89 = arith.constant 0 : index
    %190 = vector.load %arg9[%c0_87, %c0_88, %c0_89] : memref<1x8x128xf32, #tpu.memory_space<vmem>>, vector<1x8x128xf32>
    %191 = vector.shape_cast %190 : vector<1x8x128xf32> to vector<8x128xf32>
    %192 = vector.shape_cast %189 : vector<8x128xf32> to vector<1x8x128xf32>
    tpu.vector_store %arg9[%c0_87, %c0_88, %c0_89], %192 {strides = array<i32>} : memref<1x8x128xf32, #tpu.memory_space<vmem>>, vector<1x8x128xf32>,
    return
  }
  func.func @transform_0(%arg0: i32, %arg1: i32, %arg2: memref<8x16xi32, #tpu.memory_space<smem>>) -> (i32, i32, i32) {
    %c0_i32 = arith.constant 0 : i32
    %c0_i32_0 = arith.constant 0 : i32
    %c0_i32_1 = arith.constant 0 : i32
    %c0_i32_2 = arith.constant 0 : i32
    return %c0_i32, %c0_i32_0, %c0_i32_1 : i32, i32, i32
  }
  func.func @transform_1(%arg0: i32, %arg1: i32, %arg2: memref<8x16xi32, #tpu.memory_space<smem>>) -> (i32, i32, i32) {
    %c0_i32 = arith.constant 0 : i32
    %c0_i32_0 = arith.constant 0 : i32
    %c0_i32_1 = arith.constant 0 : i32
    return %c0_i32, %arg0, %c0_i32_0 : i32, i32, i32
  }
  func.func @transform_2(%arg0: i32, %arg1: i32, %arg2: memref<8x16xi32, #tpu.memory_space<smem>>) -> (i32, i32, i32) {
    %c0_i32 = arith.constant 0 : i32
    %c0_i32_0 = arith.constant 0 : i32
    %c0_i32_1 = arith.constant 0 : i32
    %c0_i32_2 = arith.constant 0 : i32
    return %c0_i32, %c0_i32_0, %c0_i32_1 : i32, i32, i32
  }
  func.func @transform_3(%arg0: i32, %arg1: i32, %arg2: memref<8x16xi32, #tpu.memory_space<smem>>) -> (i32, i32, i32) {
    %c0_i32 = arith.constant 0 : i32
    %c0_i32_0 = arith.constant 0 : i32
    %c0_i32_1 = arith.constant 0 : i32
    %c0_i32_2 = arith.constant 0 : i32
    return %c0_i32, %c0_i32_0, %c0_i32_1 : i32, i32, i32
  }
  func.func @transform_4(%arg0: i32, %arg1: i32, %arg2: memref<8x16xi32, #tpu.memory_space<smem>>) -> (i32, i32) {
    %c0_i32 = arith.constant 0 : i32
    %c0_i32_0 = arith.constant 0 : i32
    %c0_i32_1 = arith.constant 0 : i32
    return %c0_i32, %c0_i32_0 : i32, i32
  }
  func.func @transform_5(%arg0: i32, %arg1: i32, %arg2: memref<8x16xi32, #tpu.memory_space<smem>>) -> (i32, i32) {
    %c0_i32 = arith.constant 0 : i32
    %c0_i32_0 = arith.constant 0 : i32
    %c0_i32_1 = arith.constant 0 : i32
    return %c0_i32, %c0_i32_0 : i32, i32
  }
  func.func @transform_6(%arg0: i32, %arg1: i32, %arg2: memref<8x16xi32, #tpu.memory_space<smem>>) -> (i32, i32, i32) {
    %c0_i32 = arith.constant 0 : i32
    %c0_i32_0 = arith.constant 0 : i32
    return %arg1, %arg0, %c0_i32 : i32, i32, i32
  }
  func.func @transform_7(%arg0: i32, %arg1: i32, %arg2: memref<8x16xi32, #tpu.memory_space<smem>>) -> (i32, i32, i32) {
    %c0_i32 = arith.constant 0 : i32
    %c0_i32_0 = arith.constant 0 : i32
    %c0_i32_1 = arith.constant 0 : i32
    return %c0_i32, %arg0, %c0_i32_0 : i32, i32, i32
  }
}

</mosaic_0001>

<bundles_post_ra>
// kernel: tpu_custom_call.1
= control target key start
LH: loop header
LB: loop body
LE: loop exit
PB: predicated region body
PF: predicated region fallthrough
CT: control target
= control target key end

     0   :  { %s4003_s30 = smov [#allocation4]   ;;  %s4540_s0 = inlined_call_operand.hbm [shape: s32[8,16], index: 0, kind: input, shape index: {}]   ;;  %s4541_s1 = inlined_call_operand.hbm [shape: f32[64,1,128], index: 1, kind: input, shape index: {}]   ;;  %s4542_s2 = inlined_call_operand.hbm [shape: f32[3,16,128], index: 2, kind: input, shape index: {}]   ;;  %s4543_s3 = inlined_call_operand.hbm [shape: bf16[3,256,512], index: 3, kind: input, shape index: {}]   ;;  %s4544_s4 = inlined_call_operand.hbm [shape: f32[3,1,512], index: 4, kind: input, shape index: {}]   ;;  %s4545_s5 = inlined_call_operand.hbm [shape: bf16[128,128], index: 5, kind: input, shape index: {}]   ;;  %s4546_s6 = inlined_call_operand.vmem [shape: f32[1,128], index: 6, kind: input, shape index: {}]   ;;  %s4547_s7 = inlined_call_operand.hbm [shape: f32[8,16,128], index: 7, kind: output, shape index: {0}]   ;;  %s4548_s8 = inlined_call_operand.hbm [shape: f32[3,16,128], index: 8, kind: output, shape index: {1}]  }
   0x1   :  { %4569 = sst [smem:[#allocation35_spill]] %s4541_s1  ;;  %s15_s29 = sshll.u32 %s4540_s0, 4  ;;  %s16_s29 = int_to_ptr.hbm [resolvable:$true] %s15_s29 }
   0x2   :  { %4570 = sst [smem:[#allocation36_spill]] %s4542_s2 }
   0x3   :  { %4571 = sst [smem:[#allocation37_spill]] %s4543_s3 }
   0x4   :  { %4572 = sst [smem:[#allocation38_spill]] %s4544_s4 }
   0x5   :  { %4573 = sst [smem:[#allocation39_spill]] %s4545_s5 }
   0x6   :  { %4574 = sst [smem:[#allocation40_spill]] %s4546_s6 }
   0x7   :  { %4575 = sst [smem:[#allocation41_spill]] %s4547_s7 }
   0x8   :  { %4576 = sst [smem:[#allocation42_spill]] %s4548_s8 }
   0x9   :  { %18 = dma.hbm_to_smem %s16_s29, 128, %s4003_s30, [#allocation3] }
   0xa   :  { %3933 = dma.done.wait [#allocation3], 128 }
   0xb   :  { %3934 = vsyncadd [#allocation3], 4294967168 }
   0xc   :  { %21 = sfence }
   0xd   :  { %22 = vsyncpa [#allocation6], 0 }
   0xe   :  { %23 = vsyncpa [#allocation9], 0 }
   0xf   :  { %25 = vsyncpa [#allocation9 + $0x1], 0 }
  0x10   :  { %26 = vsyncpa [#allocation12], 0 }
  0x11   :  { %27 = vsyncpa [#allocation7], 0 }
  0x12   :  { %29 = vsyncpa [#allocation7 + $0x1], 0 }
  0x13   :  { %30 = vsyncpa [#allocation16], 0 }
  0x14   :  { %32 = vsyncpa [#allocation16 + $0x1], 0  ;;  %s4066_s9 = smov 0   ;;  %s4068_s10 = smov 0  }
  0x15   :  { %s4070_s11 = smov 0   ;;  %s4072_s0 = smov 0  }
  0x16   :  { %s4074_s12 = smov 0   ;;  %s4076_s13 = smov 0  }
  0x17   :  { %s4078_s14 = smov 0   ;;  %s4080_s15 = smov 0  }
  0x18   :  { %s4082_s16 = smov 0   ;;  %s4084_s17 = smov 0  }
  0x19   :  { %s4086_s18 = smov 0  }
  0x1a LB: > { %4577 = sst [smem:[#allocation24_spill]] %s3961_s9  ;;  %s4122_s19 = sadd.s32 4294967295, %s4001_s18   ;;  %s4001_s18 = sphi %s4086_s18, %s38_s18   ;;  %s3997_s17 = sphi %s4084_s17, %s4635_s17   ;;  %s3993_s16 = sphi %s4082_s16, %s4634_s16   ;;  %s3989_s15 = sphi %s4080_s15, %s4633_s15   ;;  %s3985_s14 = sphi %s4078_s14, %s4632_s14   ;;  %s3981_s13 = sphi %s4076_s13, %s4641_s13   ;;  %s3977_s12 = sphi %s4074_s12, %s4640_s12   ;;  %s3973_s0 = sphi %s4072_s0, %s4639_s0   ;;  %s3969_s11 = sphi %s4070_s11, %s4638_s11   ;;  %s3965_s10 = sphi %s4068_s10, %s4637_s10   ;;  %s3961_s9 = sphi %s4066_s9, %s4636_s9  }
  0x1b   : > { %4578 = sst [smem:[#allocation25_spill]] %s3973_s0  ;;  %s2439_s20 = sadd.s32 4294967294, %s4001_s18  }
  0x1c   : > { %4579 = sst [smem:[#allocation26_spill]] %s3993_s16  ;;  %p85_p0 = scmp.ne.s32.totalorder %s3981_s13, %s3977_s12 }
  0x1d   : > { %4580 = sst [smem:[#allocation27_spill]] %s3997_s17  ;;  %p86_p1 = scmp.eq.s32.totalorder %s4001_s18, 0 }
  0x1e   : > { %p91_p2 = scmp.ne.s32.totalorder %s3977_s12, %s3973_s0  ;;  %p4549_p3 = scmp.eq.s32.totalorder %s4122_s19, 0 }
  0x1f   : > { %p4133_p4 = por %p86_p1, %p85_p0  ;;  %p200_p5 = scmp.ne.s32.totalorder %s3969_s11, %s3965_s10 }
  0x20   : > { %p4141_p6 = por %p4549_p3, %p91_p2  ;;  %p201_p7 = scmp.eq.s32.totalorder %s4122_s19, 15 }
  0x21   : > { %p206_p8 = scmp.ne.s32.totalorder %s3965_s10, %s3961_s9  ;;  %p207_p9 = scmp.eq.s32.totalorder %s2439_s20, 15 }
  0x22   : > { %s4582_s24 = scalar_select %p4141_p6, 1, 0 }
  0x23   : > { %p4148_p10 = por %p201_p7, %p200_p5  ;;  %p4152_p11 = por %p201_p7, %p85_p0 }
  0x24   : > { %p4156_p12 = por %p207_p9, %p206_p8  ;;  %p4160_p13 = por %p207_p9, %p91_p2 }
  0x25   : > { %s4583_s25 = scalar_select %p4148_p10, 1, 0 }
  0x26   : > { %s4585_s26 = scalar_select %p4152_p11, 1, 0 }
  0x27   : > { %4584 = sst [smem:[#allocation28_spill]] %s4583_s25  ;;  %p2440_p1 = scmp.ge.s32.totalorder %s4001_s18, 1 }
  0x28   : > { %4586 = sst [smem:[#allocation29_spill]] %s4585_s26  ;;  %p240_p3 = scmp.lt.s32.totalorder %s4001_s18, 17 }
  0x29   : > { %s4587_s27 = scalar_select %p4156_p12, 1, 0 }
  0x2a   : > { %s4589_s28 = scalar_select %p4160_p13, 1, 0 }
  0x2b   : > { %4588 = sst [smem:[#allocation30_spill]] %s4587_s27  ;;  %p4166_p6 = pnand %p2440_p1, %p240_p3 }
  0x2c   : > { %4590 = sst [smem:[#allocation31_spill]] %s4589_s28  ;;  %s4004_s21 = smov [#allocation10]  }
  0x2d   : > { %s4592_s3 = sld [smem:[#allocation37_spill]]  ;;  %p3503_p0 = pneg %p4166_p6 }
  0x2e   : > { %s267_s0 = sshll.u32 %s4004_s21, 4  ;;  %p4593_p2 = scmp.eq.s32.totalorder %s4122_s19, 0  ;;  %s268_s0 = int_to_ptr.vmem [resolvable:$true] %s267_s0 }
  0x2f   : > { %p3531_p3 = scmp.lt.s32.totalorder %s4001_s18, 16  ;;  %s4595_s4 = sld [smem:[#allocation38_spill]] }
  0x30   : > { %p4177_p5 = pnand %p3503_p0, %p4593_p2  ;;  %s4559_s20 = smov 256  }
  0x31   : > { %p4191_p7 = pnand %p3531_p3, %p4133_p4  ;;  %s4007_s6 = smov [#allocation11]  }
  0x32   : > { %s281_s7 = sshll.u32 %s4007_s6, 4  ;;  %s4008_s25 = smov 64   ;;  %s282_s7 = int_to_ptr.vmem [resolvable:$true] %s281_s7 }
  0x33   : > { %s265_s22 = sshll.u32 %s4592_s3, 4  ;;  %s4006_s3 = smov 16   ;;  %s266_s22 = int_to_ptr.hbm [resolvable:$true] %s265_s22 }
  0x34   : > { %3509 = dma.hbm_to_vmem [thread:$0]  (!%p4177_p5), %s266_s22, 24576, %s268_s0, [#allocation9], %s4559_s20, %s4559_s20, %s4006_s3  }
  0x35   : > { %s279_s30 = sshll.u32 %s4595_s4, 4  ;;  %s4009_s9 = smov 4   ;;  %s280_s30 = int_to_ptr.hbm [resolvable:$true] %s279_s30 }
  0x36   : > { %3512 = dma.hbm_to_vmem [thread:$0]  (!%p4177_p5), %s280_s30, 192, %s282_s7, [#allocation12], %s4008_s25, %s4008_s25, %s4009_s9  }
  0x37   : > { %s4597_s1 = sld [smem:[#allocation35_spill]]  ;;  %s4010_s0 = smov [#allocation5]  }
  0x38   : > { %s253_s22 = sshll.u32 %s4010_s0, 4  ;;  %s4598_s5 = sld [smem:[#allocation39_spill]]  ;;  %s254_s22 = int_to_ptr.vmem [resolvable:$true] %s253_s22 }
  0x39   : > { %s4011_s26 = smov 1   ;;  %s4012_s7 = smov [#allocation13]  }
  0x3a   : > { %s295_s4 = sshll.u32 %s4012_s7, 4  ;;  %s47_s30 = sadd.s32 1, %s3993_s16  ;;  %s296_s4 = int_to_ptr.vmem [resolvable:$true] %s295_s4 }
  0x3b   : > { %s50_s27 = sadd.s32 1, %s3997_s17  ;;  %p48_p4 = scmp.ge.s32.totalorder %s47_s30, 8 }
  0x3c   : > { %s312_s0 = sand.u32 1, %s4001_s18   ;;  %s4600_s2 = sld [smem:[#allocation36_spill]] }
  0x3d   : > { %s251_s8 = sshll.u32 %s4597_s1, 4  ;;  %s314_s1 = sand.u32 1, %s3981_s13   ;;  %s252_s8 = int_to_ptr.hbm [resolvable:$true] %s251_s8 }
  0x3e   : > { %s293_s20 = sshll.u32 %s4598_s5, 4  ;;  %s4643_s30 = smov (%p48_p4, %s47_s30), 0  ;;  %s294_s20 = int_to_ptr.hbm [resolvable:$true] %s293_s20 }
  0x3f   : > { %3506 = dma.hbm_to_vmem [thread:$0]  (!%p4177_p5), %s252_s8, 1024, %s254_s22, [#allocation6], %s4006_s3, %s4006_s3, %s4011_s26  }
  0x40   : > { %3515 = dma.hbm_to_vmem [thread:$0]  (!%p4177_p5), %s294_s20, 1024, %s296_s4, [#allocation12], %s4008_s25, %s4008_s25, %s4009_s9  }
  0x41   : > { %4599 = sst [smem:[#allocation32_spill]] %s4643_s30  ;;  %s4645_s27 = smov (!%p48_p4, %s50_s27), %s3997_s17 }
  0x42   : > { %s185_s3 = ssub.s32 %s3993_s16, %s4643_s30  ;;  %s3479_s8 = smul.u32 24, %s314_s1 }
  0x43   : > { %p52_p8 = scmp.ge.s32.totalorder %s4645_s27, 2  ;;  %s2446_s26 = sshll.u32 %s3997_s17, 3 }
  0x44   : > { %s320_s20 = scalar_lea.hbm %s4600_s2, %s2446_s26  ;;  %s316_s22 = scalar_lea.vmem [#allocation8], %s3479_s8 }
  0x45   : > { %s4647_s27 = smov (%p52_p8, %s4645_s27), 0  ;;  %s321_s9 = sshll.u32 %s320_s20, 4  ;;  %s322_s9 = int_to_ptr.hbm [resolvable:$true] %s321_s9 }
  0x46   : > { %4601 = sst [smem:[#allocation33_spill]] %s4647_s27  ;;  %s323_s6 = sshll.u32 %s316_s22, 4  ;;  %s324_s6 = int_to_ptr.vmem [resolvable:$true] %s323_s6 }
  0x47   : > { %s75_s23 = ssub.s32 %s3997_s17, %s4647_s27  ;;  %s4602_s1 = sadd.s32 1, %s3981_s13 }
  0x48   : > { %p76_p9 = scmp.eq.s32.totalorder %s75_s23, 0  ;;  %s187_s7 = sor.u32 %s185_s3, %s75_s23 }
  0x49   : > { %p188_p1 = scmp.eq.s32.totalorder %s187_s7, 0  ;;  %s4604_s5 = sadd.s32 1, %s3969_s11 }
  0x4a   : > { %s4227_s4 = scalar_select %p76_p9, %s3981_s13, %s4602_s1  }
  0x4b   : > { %s4232_s30 = scalar_select %p188_p1, %s3969_s11, %s4604_s5  }
  0x4c   : > { %4603 = sst [smem:[#allocation34_spill]] %s4227_s4  ;;  %s313_s26 = scalar_lea.sflag [#allocation9], %s312_s0 }
  0x4d   : > { %s4013_s28 = smov 128   ;;  %s4014_s25 = smov 8  }
  0x4e   : > { %s4605_s2 = smov 256   ;;  %335 = sbr.rel (%p4166_p6) target bundleno = 836 (0x344), region = 44 }
  0x4f   : > { %3519 = dma.hbm_to_vmem [thread:$0]  (!%p4191_p7), %s322_s9, 384, %s324_s6, %s313_s26, %s4605_s2, %s4013_s28, %s4014_s25  }
  0x50   : > { %p4606_p0 = scmp.eq.s32.totalorder (!%p4166_p6), %s4122_s19, 0 }
  0x53   : > { %3936 = dma.done.wait (%p4606_p0), [#allocation6], 1024   ;;  %p4607_p2 = pmov %p4606_p0 }
  0x54   : > { %s342_s5 = sand.u32 1, %s4122_s19   ;;  %s4564_s0 = sand.u32 1, %s3977_s12  }
  0x55   : > { %3938 = vsyncadd (%p4607_p2), [#allocation6], 4294966272  ;;  %s3480_s3 = smul.u32 24, %s4564_s0  ;;  %s343_s21 = scalar_lea.sflag [#allocation9], %s342_s5 }
  0x56   : > { %p4608_p5 = scmp.ne.s32.totalorder %s4582_s24, 0 }
  0x57   : > { %s346_s8 = scalar_lea.vmem [#allocation8], %s3480_s3 }
  0x58   : > { %3940 = dma.done.wait (%p4608_p5), %s343_s21, 384  }
  0x59   : > { %3942 = vsyncadd (%p4608_p5), %s343_s21, 4294966912  ;;  %p4609_p6 = pmov %p4606_p0 }
  0x5a   : > { %p4610_p3 = pmov %p4606_p0 }
  0x5b   : > { %3944 = dma.done.wait (%p4609_p6), [#allocation9], 24576  }
  0x5c   : > { %3946 = vsyncadd (%p4610_p3), [#allocation9], 4294942720  ;;  %p4611_p7 = pmov %p4606_p0 }
  0x5d   : > { %p4612_p4 = pmov %p4606_p0 }
  0x5e   : > { %3948 = dma.done.wait (%p4611_p7), [#allocation12], 1216  }
  0x5f   : > { %3950 = vsyncadd (%p4612_p4), [#allocation12], 4294966080  ;;  %s4563_s2 = sand.u32 1, %s3965_s10   ;;  %s4265_s20 = scalar_lea.vmem [#allocation15], %s3480_s3 }
  0x60   : > { %s4262_s29 = sshll.u32 %s4563_s2, 3  ;;  %p2453_p8 = scmp.ne.s32.totalorder %s3985_s14, 0 }
  0x62   : > { %401 = sbr.rel (%p2453_p8) target bundleno = 107 (0x6b), region = 68 }
  0x67   : > { %v402_v0 = vld [vmem:[%s346_s8] sm:$0xff]  ;;  %v403_v1 = vld [vmem:[%s346_s8 + $0x8] sm:$0xff]  ;;  %v404_v2 = vld [vmem:[%s346_s8 + $0x10] sm:$0xff] }
  0x68   : > { %405 = vst [vmem:[%s4265_s20] sm:$0xff] %v402_v0 }
  0x69   : > { %406 = vst [vmem:[%s4265_s20 + $0x8] sm:$0xff] %v403_v1 }
  0x6a   : > { %407 = vst [vmem:[%s4265_s20 + $0x10] sm:$0xff] %v404_v2 }
  0x6b PF: > { %v2577_v3 = vld [vmem:[#allocation10 + $0xe0] sm:$0xf]  ;;  %v3309_v4 = vld [vmem:[#allocation10 + $0xec] sm:$0xf0]  ;;  %v3307_v5 = vld [vmem:[#allocation10 + $0xe4] sm:$0xf] }
  0x6c   : > { %v2578_v6 = vor.u32 %v3309_v4, %v2577_v3  ;;  %v2579_v7 = vld [vmem:[#allocation10 + $0xf0] sm:$0xf0]  ;;  %v3339_v8 = vld [vmem:[#allocation10 + $0x1e4] sm:$0xf]  ;;  %v2705_v12 = vld [vmem:[#allocation10 + $0x1e0] sm:$0xf] }
  0x6d   : > { %v2707_v9 = vld [vmem:[#allocation10 + $0x1f0] sm:$0xf0]  ;;  %v2582_v10 = vor.u32 %v3307_v5, %v2579_v7  ;;  %v3341_v13 = vld [vmem:[#allocation10 + $0x1ec] sm:$0xf0]  ;;  %v2561_v14 = vld [vmem:[#allocation10 + $0xc0] sm:$0xf] }
  0x6e   : > { %v2710_v11 = vor.u32 %v3339_v8, %v2707_v9  ;;  %902 = vmatpush.bf16.msra.mxu0 %v2578_v6  ;;  %v2706_v15 = vor.u32 %v3341_v13, %v2705_v12  ;;  %v3305_v16 = vld [vmem:[#allocation10 + $0xcc] sm:$0xf0]  ;;  %v3303_v17 = vld [vmem:[#allocation10 + $0xc4] sm:$0xf]  ;;  %v2563_v18 = vld [vmem:[#allocation10 + $0xd0] sm:$0xf0] }
  0x6f   : > { %928 = vmatpush.bf16.msra.mxu2 %v2582_v10  ;;  %v2562_v19 = vor.u32 %v3305_v16, %v2561_v14  ;;  %v2566_v20 = vor.u32 %v3303_v17, %v2563_v18  ;;  %v3335_v21 = vld [vmem:[#allocation10 + $0x1c4] sm:$0xf]  ;;  %v2691_v22 = vld [vmem:[#allocation10 + $0x1d0] sm:$0xf0]  ;;  %v2689_v23 = vld [vmem:[#allocation10 + $0x1c0] sm:$0xf] }
  0x70   : > { %941 = vmatpush.bf16.msra.mxu3 %v2710_v11  ;;  %915 = vmatpush.bf16.msra.mxu1 %v2706_v15  ;;  %v2694_v24 = vor.u32 %v3335_v21, %v2691_v22  ;;  %v3337_v25 = vld [vmem:[#allocation10 + $0x1cc] sm:$0xf0]  ;;  %v2545_v26 = vld [vmem:[#allocation10 + $0xa0] sm:$0xf]  ;;  %v3299_v29 = vld [vmem:[#allocation10 + $0xa4] sm:$0xf] }
  0x71   : > { %v3301_v27 = vld [vmem:[#allocation10 + $0xac] sm:$0xf0]  ;;  %v2690_v28 = vor.u32 %v3337_v25, %v2689_v23  ;;  %v2547_v30 = vld [vmem:[#allocation10 + $0xb0] sm:$0xf0]  ;;  %v3331_v31 = vld [vmem:[#allocation10 + $0x1a4] sm:$0xf] }
  0x72   : > { %903 = vmatpush.bf16.msra.mxu0 %v2562_v19  ;;  %v2546_v32 = vor.u32 %v3301_v27, %v2545_v26  ;;  %v2675_v33 = vld [vmem:[#allocation10 + $0x1b0] sm:$0xf0]  ;;  %v2673_v34 = vld [vmem:[#allocation10 + $0x1a0] sm:$0xf]  ;;  %v3333_v35 = vld [vmem:[#allocation10 + $0x1ac] sm:$0xf0]  ;;  %v2550_v36 = vor.u32 %v3299_v29, %v2547_v30 }
  0x73   : > { %929 = vmatpush.bf16.msra.mxu2 %v2566_v20  ;;  %v2678_v37 = vor.u32 %v3331_v31, %v2675_v33  ;;  %v2529_v38 = vld [vmem:[#allocation10 + $0x80] sm:$0xf]  ;;  %v3297_v39 = vld [vmem:[#allocation10 + $0x8c] sm:$0xf0]  ;;  %v3295_v40 = vld [vmem:[#allocation10 + $0x84] sm:$0xf]  ;;  %v2674_v41 = vor.u32 %v3333_v35, %v2673_v34 }
  0x74   : > { %942 = vmatpush.bf16.msra.mxu3 %v2694_v24  ;;  %916 = vmatpush.bf16.msra.mxu1 %v2690_v28  ;;  %v2531_v42 = vld [vmem:[#allocation10 + $0x90] sm:$0xf0]  ;;  %v3327_v43 = vld [vmem:[#allocation10 + $0x184] sm:$0xf]  ;;  %v2657_v45 = vld [vmem:[#allocation10 + $0x180] sm:$0xf]  ;;  %v2530_v47 = vor.u32 %v3297_v39, %v2529_v38 }
  0x75   : > { %v2659_v44 = vld [vmem:[#allocation10 + $0x190] sm:$0xf0]  ;;  %v3329_v46 = vld [vmem:[#allocation10 + $0x18c] sm:$0xf0]  ;;  %v2534_v48 = vor.u32 %v3295_v40, %v2531_v42  ;;  %v2513_v50 = vld [vmem:[#allocation10 + $0x60] sm:$0xf] }
  0x76   : > { %904 = vmatpush.bf16.msra.mxu0 %v2546_v32  ;;  %v2662_v49 = vor.u32 %v3327_v43, %v2659_v44  ;;  %v3293_v51 = vld [vmem:[#allocation10 + $0x6c] sm:$0xf0]  ;;  %v3291_v52 = vld [vmem:[#allocation10 + $0x64] sm:$0xf]  ;;  %v2658_v53 = vor.u32 %v3329_v46, %v2657_v45  ;;  %v2515_v54 = vld [vmem:[#allocation10 + $0x70] sm:$0xf0] }
  0x77   : > { %930 = vmatpush.bf16.msra.mxu2 %v2550_v36  ;;  %v3323_v55 = vld [vmem:[#allocation10 + $0x164] sm:$0xf]  ;;  %v2643_v56 = vld [vmem:[#allocation10 + $0x170] sm:$0xf0]  ;;  %v2641_v57 = vld [vmem:[#allocation10 + $0x160] sm:$0xf]  ;;  %v2514_v59 = vor.u32 %v3293_v51, %v2513_v50  ;;  %v2518_v60 = vor.u32 %v3291_v52, %v2515_v54 }
  0x78   : > { %943 = vmatpush.bf16.msra.mxu3 %v2678_v37  ;;  %917 = vmatpush.bf16.msra.mxu1 %v2674_v41  ;;  %v3325_v58 = vld [vmem:[#allocation10 + $0x16c] sm:$0xf0]  ;;  %v2646_v61 = vor.u32 %v3323_v55, %v2643_v56  ;;  %v2497_v62 = vld [vmem:[#allocation10 + $0x40] sm:$0xf]  ;;  %v3287_v0 = vld [vmem:[#allocation10 + $0x44] sm:$0xf] }
  0x79   : > { %v3289_v63 = vld [vmem:[#allocation10 + $0x4c] sm:$0xf0]  ;;  %v2642_v1 = vor.u32 %v3325_v58, %v2641_v57  ;;  %v2499_v2 = vld [vmem:[#allocation10 + $0x50] sm:$0xf0]  ;;  %v3319_v3 = vld [vmem:[#allocation10 + $0x144] sm:$0xf] }
  0x7a   : > { %905 = vmatpush.bf16.msra.mxu0 %v2530_v47  ;;  %v2627_v4 = vld [vmem:[#allocation10 + $0x150] sm:$0xf0]  ;;  %v2625_v5 = vld [vmem:[#allocation10 + $0x140] sm:$0xf]  ;;  %v3321_v6 = vld [vmem:[#allocation10 + $0x14c] sm:$0xf0]  ;;  %v2498_v7 = vor.u32 %v3289_v63, %v2497_v62  ;;  %v2502_v9 = vor.u32 %v3287_v0, %v2499_v2 }
  0x7b   : > { %931 = vmatpush.bf16.msra.mxu2 %v2534_v48  ;;  %v2481_v8 = vld [vmem:[#allocation10 + $0x20] sm:$0xf]  ;;  %v2630_v10 = vor.u32 %v3319_v3, %v2627_v4  ;;  %v3285_v11 = vld [vmem:[#allocation10 + $0x2c] sm:$0xf0]  ;;  %v3283_v12 = vld [vmem:[#allocation10 + $0x24] sm:$0xf]  ;;  %v2626_v14 = vor.u32 %v3321_v6, %v2625_v5 }
  0x7c   : > { %944 = vmatpush.bf16.msra.mxu3 %v2662_v49  ;;  %918 = vmatpush.bf16.msra.mxu1 %v2658_v53  ;;  %v2483_v13 = vld [vmem:[#allocation10 + $0x30] sm:$0xf0]  ;;  %v3315_v15 = vld [vmem:[#allocation10 + $0x124] sm:$0xf]  ;;  %v2609_v17 = vld [vmem:[#allocation10 + $0x120] sm:$0xf]  ;;  %v2482_v21 = vor.u32 %v3285_v11, %v2481_v8 }
  0x7d   : > { %v2611_v16 = vld [vmem:[#allocation10 + $0x130] sm:$0xf0]  ;;  %v3317_v18 = vld [vmem:[#allocation10 + $0x12c] sm:$0xf0]  ;;  %v2465_v19 = vld [vmem:[#allocation10] sm:$0xf]  ;;  %v2486_v25 = vor.u32 %v3283_v12, %v2483_v13 }
  0x7e   : > { %906 = vmatpush.bf16.msra.mxu0 %v2514_v59  ;;  %v3281_v20 = vld [vmem:[#allocation10 + $0xc] sm:$0xf0]  ;;  %v3279_v22 = vld [vmem:[#allocation10 + $0x4] sm:$0xf]  ;;  %v2467_v23 = vld [vmem:[#allocation10 + $0x10] sm:$0xf0]  ;;  %v2614_v26 = vor.u32 %v3315_v15, %v2611_v16  ;;  %v2610_v29 = vor.u32 %v3317_v18, %v2609_v17 }
  0x7f   : > { %932 = vmatpush.bf16.msra.mxu2 %v2518_v60  ;;  %v3311_v24 = vld [vmem:[#allocation10 + $0x104] sm:$0xf]  ;;  %s4272_s19 = sshll.u32 %s3989_s15, 3  ;;  %v2595_v27 = vld [vmem:[#allocation10 + $0x110] sm:$0xf0]  ;;  %v2466_v34 = vor.u32 %v3281_v20, %v2465_v19  ;;  %v2470_v38 = vor.u32 %v3279_v22, %v2467_v23 }
  0x80   : > { %945 = vmatpush.bf16.msra.mxu3 %v2646_v61  ;;  %919 = vmatpush.bf16.msra.mxu1 %v2642_v1  ;;  %v2593_v28 = vld [vmem:[#allocation10 + $0x100] sm:$0xf]  ;;  %s409_s9 = sshra.s32 %s4272_s19, 7  ;;  %s414_s22 = sand.u32 127, %s4272_s19  ;;  %v3313_v30 = vld [vmem:[#allocation10 + $0x10c] sm:$0xf0]  ;;  %v2598_v39 = vor.u32 %v3311_v24, %v2595_v27 }
  0x81   : > { %v2585_v31 = vld [vmem:[#allocation10 + $0xe8] sm:$0xf]  ;;  %s411_s6 = sadd.s32 %s3985_s14, %s409_s9  ;;  %s420_s23 = sadd.s32 1, %s4272_s19  ;;  %v3310_v32 = vld [vmem:[#allocation10 + $0xf4] sm:$0xf0]  ;;  %v2594_v40 = vor.u32 %v3313_v30, %v2593_v28 }
  0x82   : > { %907 = vmatpush.bf16.msra.mxu0 %v2498_v7  ;;  %v3308_v33 = vld [vmem:[#allocation10 + $0xec] sm:$0xf]  ;;  %s2455_s7 = sshll.u32 %s411_s6, 7  ;;  %s421_s1 = sshra.s32 %s420_s23, 7  ;;  %v2587_v35 = vld [vmem:[#allocation10 + $0xf8] sm:$0xf0]  ;;  %v2586_v41 = vor.u32 %v3310_v32, %v2585_v31 }
  0x83   : > { %933 = vmatpush.bf16.msra.mxu2 %v2502_v9  ;;  %v3340_v36 = vld [vmem:[#allocation10 + $0x1ec] sm:$0xf]  ;;  %v2715_v37 = vld [vmem:[#allocation10 + $0x1f8] sm:$0xf0]  ;;  %s415_s26 = sadd.s32 %s2455_s7, %s414_s22  ;;  %s423_s28 = sadd.s32 %s3985_s14, %s421_s1  ;;  %v2590_v42 = vor.u32 %v3308_v33, %v2587_v35  ;;  %v2713_v46 = vld [vmem:[#allocation10 + $0x1e8] sm:$0xf] }
  0x84   : > { %946 = vmatpush.bf16.msra.mxu3 %v2630_v10  ;;  %920 = vmatpush.bf16.msra.mxu1 %v2626_v14  ;;  %s416_s25 = sld [smem:[#allocation4 + %s415_s26]]  ;;  %s2456_s5 = sshll.u32 %s423_s28, 7  ;;  %v2718_v43 = vor.u32 %v3340_v36, %v2715_v37  ;;  %v3342_v47 = vld [vmem:[#allocation10 + $0x1f4] sm:$0xf0]  ;;  %v2569_v51 = vld [vmem:[#allocation10 + $0xc8] sm:$0xf] }
  0x85   : > { %s426_s3 = sand.u32 127, %s420_s23  ;;  %s432_s21 = sadd.s32 2, %s4272_s19  ;;  %v4288_v48 = vld [vmem:[%s4265_s20] sm:$0xff]  ;;  %v2714_v49 = vor.u32 %v3342_v47, %v2713_v46  ;;  %v3304_v55 = vld [vmem:[#allocation10 + $0xcc] sm:$0xf] }
  0x86   : > { %908 = vmatpush.bf16.msra.mxu0 %v2482_v21  ;;  %s427_s8 = sadd.s32 %s2456_s5, %s426_s3  ;;  %s433_s9 = sshra.s32 %s432_s21, 7  ;;  %v4292_v50 = vpack.c.bf16 %v4288_v48, %v4288_v48  ;;  %v3306_v52 = vld [vmem:[#allocation10 + $0xd4] sm:$0xf0]  ;;  %v2571_v56 = vld [vmem:[#allocation10 + $0xd8] sm:$0xf0] }
  0x87   : > { %934 = vmatpush.bf16.msra.mxu2 %v2486_v25  ;;  %s428_s22 = sld [smem:[#allocation4 + %s427_s8]]  ;;  %s435_s6 = sadd.s32 %s3985_s14, %s433_s9  ;;  %v2570_v54 = vor.u32 %v3306_v52, %v2569_v51  ;;  %v2574_v57 = vor.u32 %v3304_v55, %v2571_v56  ;;  %v3336_v58 = vld [vmem:[#allocation10 + $0x1cc] sm:$0xf]  ;;  %v2699_v59 = vld [vmem:[#allocation10 + $0x1d8] sm:$0xf0] }
  0x88   : > { %947 = vmatpush.bf16.msra.mxu3 %v2614_v26  ;;  %921 = vmatpush.bf16.msra.mxu1 %v2610_v29  ;;  %s2457_s7 = sshll.u32 %s435_s6, 7  ;;  %s438_s1 = sand.u32 127, %s432_s21  ;;  %v2702_v60 = vor.u32 %v3336_v58, %v2699_v59  ;;  %v2697_v61 = vld [vmem:[#allocation10 + $0x1c8] sm:$0xf]  ;;  %v3338_v62 = vld [vmem:[#allocation10 + $0x1d4] sm:$0xf0] }
  0x89   : > { %s439_s26 = sadd.s32 %s2457_s7, %s438_s1  ;;  %s444_s28 = sadd.s32 3, %s4272_s19  ;;  %v2698_v63 = vor.u32 %v3338_v62, %v2697_v61  ;;  %v2553_v0 = vld [vmem:[#allocation10 + $0xa8] sm:$0xf]  ;;  %v3302_v1 = vld [vmem:[#allocation10 + $0xb4] sm:$0xf0] }
  0x8a   : > { %909 = vmatpush.bf16.msra.mxu0 %v2466_v34  ;;  %s440_s23 = sld [smem:[#allocation4 + %s439_s26]]  ;;  %s417_s2 = scalar_lea.vmem [#allocation5], %s416_s25  ;;  %v2554_v3 = vor.u32 %v3302_v1, %v2553_v0  ;;  %v3300_v4 = vld [vmem:[#allocation10 + $0xac] sm:$0xf]  ;;  %v2555_v5 = vld [vmem:[#allocation10 + $0xb8] sm:$0xf0] }
  0x8b   : > { %935 = vmatpush.bf16.msra.mxu2 %v2470_v38  ;;  %v418_v44 = vld [vmem:[%s417_s2] sm:$0x1]  ;;  %s445_s5 = sshra.s32 %s444_s28, 7  ;;  %s450_s3 = sand.u32 127, %s444_s28  ;;  %v2558_v6 = vor.u32 %v3300_v4, %v2555_v5  ;;  %v3332_v7 = vld [vmem:[#allocation10 + $0x1ac] sm:$0xf] }
  0x8c   : > { %948 = vmatpush.bf16.msra.mxu3 %v2598_v39  ;;  %922 = vmatpush.bf16.msra.mxu1 %v2594_v40  ;;  %419 = vst [vmem:[#allocation2] sm:$0x1] %v418_v44  ;;  %s447_s8 = sadd.s32 %s3985_s14, %s445_s5  ;;  %s456_s9 = sadd.s32 4, %s4272_s19  ;;  %v2683_v8 = vld [vmem:[#allocation10 + $0x1b8] sm:$0xf0] }
  0x8d   : > { %s2458_s24 = sshll.u32 %s447_s8, 7  ;;  %s429_s0 = scalar_lea.vmem [#allocation5], %s428_s22  ;;  %v2686_v9 = vor.u32 %v3332_v7, %v2683_v8  ;;  %v2681_v10 = vld [vmem:[#allocation10 + $0x1a8] sm:$0xf]  ;;  %v3334_v11 = vld [vmem:[#allocation10 + $0x1b4] sm:$0xf0] }
  0x8e   : > { %954 = vmatpush.bf16.msrb.mxu0 %v2586_v41  ;;  %v430_v45 = vld [vmem:[%s429_s0] sm:$0x1]  ;;  %s451_s21 = sadd.s32 %s2458_s24, %s450_s3  ;;  %s457_s6 = sshra.s32 %s456_s9, 7  ;;  %v2682_v13 = vor.u32 %v3334_v11, %v2681_v10  ;;  %v3298_v15 = vld [vmem:[#allocation10 + $0x94] sm:$0xf0] }
  0x8f   : > { %980 = vmatpush.bf16.msrb.mxu2 %v2590_v42  ;;  %431 = vst [vmem:[#allocation2 + $0x1] sm:$0x1] %v430_v45  ;;  %s4284_s7 = sld [smem:[#allocation4 + %s451_s21]]  ;;  %s459_s1 = sadd.s32 %s3985_s14, %s457_s6  ;;  %949 = vmatmul.bf16.vlgmr.msra.gmra.mxu3 %v4292_v50  ;;  %v2537_v14 = vld [vmem:[#allocation10 + $0x88] sm:$0xf] }
  0x90   : > { %993 = vmatpush.bf16.msrb.mxu3 %v2718_v43  ;;  %s2459_s2 = sshll.u32 %s459_s1, 7  ;;  %s441_s0 = scalar_lea.vmem [#allocation5], %s440_s23  ;;  %967 = vmatpush.bf16.msrb.mxu1 %v2714_v49  ;;  %v2538_v16 = vor.u32 %v3298_v15, %v2537_v14  ;;  %v3296_v17 = vld [vmem:[#allocation10 + $0x8c] sm:$0xf]  ;;  %v2539_v18 = vld [vmem:[#allocation10 + $0x98] sm:$0xf0] }
  0x91   : > { %v442_v53 = vld [vmem:[%s441_s0] sm:$0x1]  ;;  %s462_s24 = sand.u32 127, %s456_s9  ;;  %s468_s25 = sadd.s32 5, %s4272_s19  ;;  %923 = vmatmul.bf16.vlgmr.msra.gmra.mxu1 %v4292_v50  ;;  %v2542_v20 = vor.u32 %v3296_v17, %v2539_v18  ;;  %v3328_v21 = vld [vmem:[#allocation10 + $0x18c] sm:$0xf] }
  0x92   : > { %443 = vst [vmem:[#allocation2 + $0x2] sm:$0x1] %v442_v53  ;;  %s463_s22 = sadd.s32 %s2459_s2, %s462_s24  ;;  %s469_s26 = sshra.s32 %s468_s25, 7  ;;  %955 = vmatpush.bf16.msrb.mxu0 %v2570_v54  ;;  %v2667_v22 = vld [vmem:[#allocation10 + $0x198] sm:$0xf0] }
  0x93   : > { %s4296_s28 = sld [smem:[#allocation4 + %s463_s22]]  ;;  %s471_s5 = sadd.s32 %s3985_s14, %s469_s26  ;;  %981 = vmatpush.bf16.msrb.mxu2 %v2574_v57  ;;  %v2665_v23 = vld [vmem:[#allocation10 + $0x188] sm:$0xf]  ;;  %v2670_v24 = vor.u32 %v3328_v21, %v2667_v22  ;;  %v3330_v25 = vld [vmem:[#allocation10 + $0x194] sm:$0xf0] }
  0x94   : > { %s2460_s23 = sshll.u32 %s471_s5, 7  ;;  %s474_s3 = sand.u32 127, %s468_s25  ;;  %994 = vmatpush.bf16.msrb.mxu3 %v2702_v60  ;;  %968 = vmatpush.bf16.msrb.mxu1 %v2698_v63  ;;  %v2521_v26 = vld [vmem:[#allocation10 + $0x68] sm:$0xf]  ;;  %v2666_v27 = vor.u32 %v3330_v25, %v2665_v23  ;;  %v3294_v28 = vld [vmem:[#allocation10 + $0x74] sm:$0xf0] }
  0x95   : > { %s475_s8 = sadd.s32 %s2460_s23, %s474_s3  ;;  %s453_s9 = scalar_lea.vmem [#allocation5], %s4284_s7  ;;  %v3292_v29 = vld [vmem:[#allocation10 + $0x6c] sm:$0xf]  ;;  %v2523_v30 = vld [vmem:[#allocation10 + $0x78] sm:$0xf0]  ;;  %v2522_v31 = vor.u32 %v3294_v28, %v2521_v26 }
  0x96   : > { %v454_v2 = vld [vmem:[%s453_s9] sm:$0x1]  ;;  %s4301_s21 = sld [smem:[#allocation4 + %s475_s8]]  ;;  %s480_s6 = sadd.s32 6, %s4272_s19  ;;  %956 = vmatpush.bf16.msrb.mxu0 %v2554_v3  ;;  %v2526_v32 = vor.u32 %v3292_v29, %v2523_v30  ;;  %v3324_v33 = vld [vmem:[#allocation10 + $0x16c] sm:$0xf] }
  0x97   : > { %455 = vst [vmem:[#allocation2 + $0x3] sm:$0x1] %v454_v2  ;;  %s481_s1 = sshra.s32 %s480_s6, 7  ;;  %s486_s2 = sand.u32 127, %s480_s6  ;;  %982 = vmatpush.bf16.msrb.mxu2 %v2558_v6  ;;  %v2651_v34 = vld [vmem:[#allocation10 + $0x178] sm:$0xf0] }
  0x98   : > { %s483_s0 = sadd.s32 %s3985_s14, %s481_s1  ;;  %s492_s24 = sadd.s32 7, %s4272_s19  ;;  %995 = vmatpush.bf16.msrb.mxu3 %v2686_v9  ;;  %969 = vmatpush.bf16.msrb.mxu1 %v2682_v13  ;;  %v2654_v36 = vor.u32 %v3324_v33, %v2651_v34  ;;  %v2649_v37 = vld [vmem:[#allocation10 + $0x168] sm:$0xf]  ;;  %v3326_v38 = vld [vmem:[#allocation10 + $0x174] sm:$0xf0] }
  0x99   : > { %s2461_s7 = sshll.u32 %s483_s0, 7  ;;  %s465_s25 = scalar_lea.vmem [#allocation5], %s4296_s28  ;;  %v2650_v39 = vor.u32 %v3326_v38, %v2649_v37  ;;  %v2505_v40 = vld [vmem:[#allocation10 + $0x48] sm:$0xf]  ;;  %v3290_v41 = vld [vmem:[#allocation10 + $0x54] sm:$0xf0] }
  0x9a   : > { %v466_v12 = vld [vmem:[%s465_s25] sm:$0x1]  ;;  %s487_s22 = sadd.s32 %s2461_s7, %s486_s2  ;;  %s493_s26 = sshra.s32 %s492_s24, 7  ;;  %957 = vmatpush.bf16.msrb.mxu0 %v2538_v16  ;;  %v2506_v42 = vor.u32 %v3290_v41, %v2505_v40  ;;  %v3288_v43 = vld [vmem:[#allocation10 + $0x4c] sm:$0xf] }
  0x9b   : > { %467 = vst [vmem:[#allocation2 + $0x4] sm:$0x1] %v466_v12  ;;  %s4307_s5 = sld [smem:[#allocation4 + %s487_s22]]  ;;  %s495_s23 = sadd.s32 %s3985_s14, %s493_s26  ;;  %983 = vmatpush.bf16.msrb.mxu2 %v2542_v20  ;;  %v2507_v44 = vld [vmem:[#allocation10 + $0x58] sm:$0xf0] }
  0x9c   : > { %s2462_s3 = sshll.u32 %s495_s23, 7  ;;  %s477_s8 = scalar_lea.vmem [#allocation5], %s4301_s21  ;;  %996 = vmatpush.bf16.msrb.mxu3 %v2670_v24  ;;  %970 = vmatpush.bf16.msrb.mxu1 %v2666_v27  ;;  %v3320_v45 = vld [vmem:[#allocation10 + $0x14c] sm:$0xf]  ;;  %v2510_v46 = vor.u32 %v3288_v43, %v2507_v44  ;;  %v2635_v47 = vld [vmem:[#allocation10 + $0x158] sm:$0xf0] }
  0x9d   : > { %v478_v19 = vld [vmem:[%s477_s8] sm:$0x1]  ;;  %s498_s28 = sand.u32 127, %s492_s24  ;;  %v2638_v52 = vor.u32 %v3320_v45, %v2635_v47  ;;  %v3322_v53 = vld [vmem:[#allocation10 + $0x154] sm:$0xf0]  ;;  %s4618_s7 = sld [smem:[#allocation42_spill]] }
  0x9e   : > { %479 = vst [vmem:[#allocation2 + $0x5] sm:$0x1] %v478_v19  ;;  %s499_s9 = sadd.s32 %s2462_s3, %s498_s28  ;;  %958 = vmatpush.bf16.msrb.mxu0 %v2522_v31  ;;  %v2633_v49 = vld [vmem:[#allocation10 + $0x148] sm:$0xf]  ;;  %v3286_v56 = vld [vmem:[#allocation10 + $0x34] sm:$0xf0] }
  0x9f   : > { %s4311_s6 = sld [smem:[#allocation4 + %s499_s9]]  ;;  %984 = vmatpush.bf16.msrb.mxu2 %v2526_v32  ;;  %v2489_v54 = vld [vmem:[#allocation10 + $0x28] sm:$0xf]  ;;  %v2634_v55 = vor.u32 %v3322_v53, %v2633_v49  ;;  %v3284_v57 = vld [vmem:[#allocation10 + $0x2c] sm:$0xf]  ;;  %s2268_s22 = sshll.u32 %s4265_s20, 4  ;;  %s2269_s22 = int_to_ptr.vmem [resolvable:$true] %s2268_s22 }
  0xa0   : > { %997 = vmatpush.bf16.msrb.mxu3 %v2654_v36  ;;  %971 = vmatpush.bf16.msrb.mxu1 %v2650_v39  ;;  %v2490_v58 = vor.u32 %v3286_v56, %v2489_v54  ;;  %v2491_v59 = vld [vmem:[#allocation10 + $0x38] sm:$0xf0]  ;;  %v3316_v60 = vld [vmem:[#allocation10 + $0x12c] sm:$0xf]  ;;  %v2617_v0 = vld [vmem:[#allocation10 + $0x128] sm:$0xf] }
  0xa1   : > { %s489_s21 = scalar_lea.vmem [#allocation5], %s4307_s5  ;;  %v2619_v61 = vld [vmem:[#allocation10 + $0x138] sm:$0xf0]  ;;  %v2494_v62 = vor.u32 %v3284_v57, %v2491_v59  ;;  %v3318_v1 = vld [vmem:[#allocation10 + $0x134] sm:$0xf0]  ;;  %s4619_s5 = sand.u32 1, %s3977_s12  }
  0xa2   : > { %v490_v35 = vld [vmem:[%s489_s21] sm:$0x1]  ;;  %959 = vmatpush.bf16.msrb.mxu0 %v2506_v42  ;;  %v2622_v63 = vor.u32 %v3316_v60, %v2619_v61  ;;  %v2618_v3 = vor.u32 %v3318_v1, %v2617_v0  ;;  %v3282_v4 = vld [vmem:[#allocation10 + $0x14] sm:$0xf0]  ;;  %v3280_v5 = vld [vmem:[#allocation10 + $0xc] sm:$0xf] }
  0xa3   : > { %491 = vst [vmem:[#allocation2 + $0x6] sm:$0x1] %v490_v35  ;;  %985 = vmatpush.bf16.msrb.mxu2 %v2510_v46  ;;  %v2473_v2 = vld [vmem:[#allocation10 + $0x8] sm:$0xf]  ;;  %v2475_v6 = vld [vmem:[#allocation10 + $0x18] sm:$0xf0]  ;;  %s2267_s25 = scalar_lea.hbm %s4618_s7, %s4272_s19 }
  0xa4   : > { %998 = vmatpush.bf16.msrb.mxu3 %v2638_v52  ;;  %972 = vmatpush.bf16.msrb.mxu1 %v2634_v55  ;;  %v2474_v7 = vor.u32 %v3282_v4, %v2473_v2  ;;  %v2478_v8 = vor.u32 %v3280_v5, %v2475_v6  ;;  %v3312_v9 = vld [vmem:[#allocation10 + $0x10c] sm:$0xf]  ;;  %v2603_v10 = vld [vmem:[#allocation10 + $0x118] sm:$0xf0]  ;;  %v2601_v11 = vld [vmem:[#allocation10 + $0x108] sm:$0xf] }
  0xa5   : > { %s501_s1 = scalar_lea.vmem [#allocation5], %s4311_s6  ;;  %v3314_v12 = vld [vmem:[#allocation10 + $0x114] sm:$0xf0]  ;;  %v2606_v14 = vor.u32 %v3312_v9, %v2603_v10  ;;  %v2836_v20 = vld [vmem:[#allocation10 + $0x2e0] sm:$0xf]  ;;  %s2270_s26 = sshll.u32 %s2267_s25, 4  ;;  %s2271_s26 = int_to_ptr.hbm [resolvable:$true] %s2270_s26 }
  0xa6   : > { %v502_v51 = vld [vmem:[%s501_s1] sm:$0x1]  ;;  %960 = vmatpush.bf16.msrb.mxu0 %v2490_v58  ;;  %v2602_v15 = vor.u32 %v3314_v12, %v2601_v11  ;;  %v3373_v21 = vld [vmem:[#allocation10 + $0x2ec] sm:$0xf0]  ;;  %v3371_v22 = vld [vmem:[#allocation10 + $0x2e4] sm:$0xf] }
  0xa7   : > { %503 = vst [vmem:[#allocation2 + $0x7] sm:$0x1] %v502_v51  ;;  %986 = vmatpush.bf16.msrb.mxu2 %v2494_v62  ;;  %v2837_v23 = vor.u32 %v3373_v21, %v2836_v20  ;;  %v2838_v24 = vld [vmem:[#allocation10 + $0x2f0] sm:$0xf0]  ;;  %v3403_v25 = vld [vmem:[#allocation10 + $0x3e4] sm:$0xf] }
  0xa8   : > { %999 = vmatpush.bf16.msrb.mxu3 %v2622_v63  ;;  %973 = vmatpush.bf16.msrb.mxu1 %v2618_v3  ;;  %v2966_v26 = vld [vmem:[#allocation10 + $0x3f0] sm:$0xf0]  ;;  %v2841_v27 = vor.u32 %v3371_v22, %v2838_v24  ;;  %v2964_v29 = vld [vmem:[#allocation10 + $0x3e0] sm:$0xf]  ;;  %v3405_v30 = vld [vmem:[#allocation10 + $0x3ec] sm:$0xf0] }
  0xa9   : > { %v2969_v28 = vor.u32 %v3403_v25, %v2966_v26  ;;  %v2820_v31 = vld [vmem:[#allocation10 + $0x2c0] sm:$0xf]  ;;  %v3369_v32 = vld [vmem:[#allocation10 + $0x2cc] sm:$0xf0]  ;;  %v3367_v33 = vld [vmem:[#allocation10 + $0x2c4] sm:$0xf] }
  0xaa   : > { %961 = vmatpush.bf16.msrb.mxu0 %v2474_v7  ;;  %v2821_v34 = vor.u32 %v3369_v32, %v2820_v31  ;;  %v2822_v35 = vld [vmem:[#allocation10 + $0x2d0] sm:$0xf0]  ;;  %v3399_v36 = vld [vmem:[#allocation10 + $0x3c4] sm:$0xf]  ;;  %v2948_v41 = vld [vmem:[#allocation10 + $0x3c0] sm:$0xf] }
  0xab   : > { %987 = vmatpush.bf16.msrb.mxu2 %v2478_v8  ;;  %v2950_v37 = vld [vmem:[#allocation10 + $0x3d0] sm:$0xf0]  ;;  %v2825_v38 = vor.u32 %v3367_v33, %v2822_v35  ;;  %v3401_v42 = vld [vmem:[#allocation10 + $0x3cc] sm:$0xf0]  ;;  %v2804_v44 = vld [vmem:[#allocation10 + $0x2a0] sm:$0xf] }
  0xac   : > { %1000 = vmatpush.bf16.msrb.mxu3 %v2606_v14  ;;  %974 = vmatpush.bf16.msrb.mxu1 %v2602_v15  ;;  %v2953_v39 = vor.u32 %v3399_v36, %v2950_v37  ;;  %v2949_v43 = vor.u32 %v3401_v42, %v2948_v41  ;;  %v3365_v45 = vld [vmem:[#allocation10 + $0x2ac] sm:$0xf0]  ;;  %v3363_v46 = vld [vmem:[#allocation10 + $0x2a4] sm:$0xf]  ;;  %v2806_v49 = vld [vmem:[#allocation10 + $0x2b0] sm:$0xf0] }
  0xad   : > { %v2805_v47 = vor.u32 %v3365_v45, %v2804_v44  ;;  %v3395_v51 = vld [vmem:[#allocation10 + $0x3a4] sm:$0xf]  ;;  %v2934_v52 = vld [vmem:[#allocation10 + $0x3b0] sm:$0xf0]  ;;  %v2809_v53 = vor.u32 %v3363_v46, %v2806_v49  ;;  %v2932_v55 = vld [vmem:[#allocation10 + $0x3a0] sm:$0xf] }
  0xae   : > { %v504_v13 = vld [vmem:[#allocation2] sm:$0xff]  ;;  %v2937_v54 = vor.u32 %v3395_v51, %v2934_v52  ;;  %v3397_v56 = vld [vmem:[#allocation10 + $0x3ac] sm:$0xf0]  ;;  %v2788_v58 = vld [vmem:[#allocation10 + $0x280] sm:$0xf]  ;;  %s2241_s23 = scalar_lea.sflag [#allocation16], %s4619_s5 }
  0xaf   : > { %v506_v16 = vpack.c.bf16 %v504_v13, %v504_v13  ;;  %1001 = vmatmul.bf16.vlgmr.msrb.gmra.mxu3 %v4292_v50  ;;  %975 = vmatmul.bf16.vlgmr.msrb.gmra.mxu1 %v4292_v50  ;;  %v2965_v50 = vor.u32 %v3405_v30, %v2964_v29  ;;  %v2933_v57 = vor.u32 %v3397_v56, %v2932_v55  ;;  %v3361_v59 = vld [vmem:[#allocation10 + $0x28c] sm:$0xf0]  ;;  %v3359_v60 = vld [vmem:[#allocation10 + $0x284] sm:$0xf]  ;;  %v2790_v62 = vld [vmem:[#allocation10 + $0x290] sm:$0xf0] }
  0xb0   : > { %1491 = vmatpush.bf16.msra.mxu3 %v2969_v28  ;;  %v2789_v61 = vor.u32 %v3361_v59, %v2788_v58  ;;  %v3391_v63 = vld [vmem:[#allocation10 + $0x384] sm:$0xf]  ;;  %v2918_v0 = vld [vmem:[#allocation10 + $0x390] sm:$0xf0]  ;;  %v2793_v1 = vor.u32 %v3359_v60, %v2790_v62  ;;  %v2916_v3 = vld [vmem:[#allocation10 + $0x380] sm:$0xf] }
  0xb1   : > { %910 = vmatmul.bf16.vlgmr.msra.gmra.mxu0 %v506_v16  ;;  %936 = vmatmul.bf16.vlgmr.msra.gmra.mxu2 %v506_v16  ;;  %v2921_v2 = vor.u32 %v3391_v63, %v2918_v0  ;;  %v3393_v4 = vld [vmem:[#allocation10 + $0x38c] sm:$0xf0]  ;;  %v4321_v5 = vld [vmem:[#allocation11] sm:$0xf]  ;;  %v3355_v9 = vld [vmem:[#allocation10 + $0x264] sm:$0xf] }
  0xb2   : > { %1452 = vmatpush.bf16.msra.mxu0 %v2837_v23  ;;  %1478 = vmatpush.bf16.msra.mxu2 %v2841_v27  ;;  %v2917_v6 = vor.u32 %v3393_v4, %v2916_v3  ;;  %v2772_v7 = vld [vmem:[#allocation10 + $0x260] sm:$0xf]  ;;  %v3357_v8 = vld [vmem:[#allocation10 + $0x26c] sm:$0xf0]  ;;  %v2774_v11 = vld [vmem:[#allocation10 + $0x270] sm:$0xf0] }
  0xb3   : > { %1465 = vmatpush.bf16.msra.mxu1 %v2965_v50  ;;  %v2773_v10 = vor.u32 %v3357_v8, %v2772_v7  ;;  %v3387_v12 = vld [vmem:[#allocation10 + $0x364] sm:$0xf]  ;;  %v2902_v13 = vld [vmem:[#allocation10 + $0x370] sm:$0xf0]  ;;  %v2777_v14 = vor.u32 %v3355_v9, %v2774_v11  ;;  %v574_v20 = vperm.slane %v4321_v5, 0  ;;  %s3847_s3 = sshra.s32 %s2271_s26, 4  ;;  %s3848_s3 = int_to_ptr.hbm [resolvable:$true] %s3847_s3 }
  0xb4   : > { %1492 = vmatpush.bf16.msra.mxu3 %v2953_v39  ;;  %v2905_v15 = vor.u32 %v3387_v12, %v2902_v13  ;;  %v2756_v22 = vld [vmem:[#allocation10 + $0x240] sm:$0xf]  ;;  %v3353_v23 = vld [vmem:[#allocation10 + $0x24c] sm:$0xf0]  ;;  %v3351_v24 = vld [vmem:[#allocation10 + $0x244] sm:$0xf]  ;;  %p3854_p2 = scmp.lt.s32.totalorder %s3848_s3, %s4618_s7 }
  0xb5   : > { %v2757_v25 = vor.u32 %v3353_v23, %v2756_v22  ;;  %v2758_v26 = vld [vmem:[#allocation10 + $0x250] sm:$0xf0]  ;;  %v3383_v27 = vld [vmem:[#allocation10 + $0x344] sm:$0xf]  ;;  %v2884_v31 = vld [vmem:[#allocation10 + $0x340] sm:$0xf] }
  0xb6   : > { %1453 = vmatpush.bf16.msra.mxu0 %v2821_v34  ;;  %1479 = vmatpush.bf16.msra.mxu2 %v2825_v38  ;;  %v2886_v28 = vld [vmem:[#allocation10 + $0x350] sm:$0xf0]  ;;  %v2761_v30 = vor.u32 %v3351_v24, %v2758_v26  ;;  %v3385_v32 = vld [vmem:[#allocation10 + $0x34c] sm:$0xf0]  ;;  %v575_v34 = vperm.slane %v4321_v5, 1  ;;  %s3849_s8 = scalar_lea.hbm %s3848_s3, 24 }
  0xb7   : > { %1466 = vmatpush.bf16.msra.mxu1 %v2949_v43  ;;  %v2889_v50 = vor.u32 %v3383_v27, %v2886_v28  ;;  %v2885_v35 = vor.u32 %v3385_v32, %v2884_v31  ;;  %v2740_v36 = vld [vmem:[#allocation10 + $0x220] sm:$0xf]  ;;  %v3349_v37 = vld [vmem:[#allocation10 + $0x22c] sm:$0xf0]  ;;  %v3347_v38 = vld [vmem:[#allocation10 + $0x224] sm:$0xf]  ;;  %p3850_p9 = scmp.ne.s32.totalorder %s3848_s3, %s3849_s8 }
  0xb8   : > { %1493 = vmatpush.bf16.msra.mxu3 %v2937_v54  ;;  %v2742_v41 = vld [vmem:[#allocation10 + $0x230] sm:$0xf0]  ;;  %v3379_v42 = vld [vmem:[#allocation10 + $0x324] sm:$0xf]  ;;  %v3381_v49 = vld [vmem:[#allocation10 + $0x32c] sm:$0xf0] }
  0xb9   : > { %v2870_v43 = vld [vmem:[#allocation10 + $0x330] sm:$0xf0]  ;;  %v2745_v45 = vor.u32 %v3347_v38, %v2742_v41  ;;  %v3345_v54 = vld [vmem:[#allocation10 + $0x20c] sm:$0xf0]  ;;  %v3343_v56 = vld [vmem:[#allocation10 + $0x204] sm:$0xf]  ;;  %p3851_p1 = pnand %p3850_p9, %p4152_p11 }
  0xba   : > { %1454 = vmatpush.bf16.msra.mxu0 %v2805_v47  ;;  %1480 = vmatpush.bf16.msra.mxu2 %v2809_v53  ;;  %v2873_v46 = vor.u32 %v3379_v42, %v2870_v43  ;;  %v2868_v47 = vld [vmem:[#allocation10 + $0x320] sm:$0xf]  ;;  %v3375_v58 = vld [vmem:[#allocation10 + $0x304] sm:$0xf]  ;;  %v2844_v62 = vld [vmem:[#allocation10 + $0x2e8] sm:$0xf] }
  0xbb   : > { %1467 = vmatpush.bf16.msra.mxu1 %v2933_v57  ;;  %v2869_v52 = vor.u32 %v3381_v49, %v2868_v47  ;;  %v2724_v53 = vld [vmem:[#allocation10 + $0x200] sm:$0xf]  ;;  %v2726_v57 = vld [vmem:[#allocation10 + $0x210] sm:$0xf0]  ;;  %v3374_v63 = vld [vmem:[#allocation10 + $0x2f4] sm:$0xf0]  ;;  %p3852_p0 = pneg %p3851_p1 }
  0xbc   : > { %1494 = vmatpush.bf16.msra.mxu3 %v2921_v2  ;;  %v2729_v60 = vor.u32 %v3343_v56, %v2726_v57  ;;  %v2845_v2 = vor.u32 %v3374_v63, %v2844_v62  ;;  %v3372_v3 = vld [vmem:[#allocation10 + $0x2ec] sm:$0xf]  ;;  %v2846_v4 = vld [vmem:[#allocation10 + $0x2f8] sm:$0xf0]  ;;  %v3377_v11 = vld [vmem:[#allocation10 + $0x30c] sm:$0xf0] }
  0xbd   : > { %v2849_v8 = vor.u32 %v3372_v3, %v2846_v4  ;;  %v2974_v9 = vld [vmem:[#allocation10 + $0x3f8] sm:$0xf0]  ;;  %v3370_v22 = vld [vmem:[#allocation10 + $0x2d4] sm:$0xf0]  ;;  %v3400_v26 = vld [vmem:[#allocation10 + $0x3cc] sm:$0xf] }
  0xbe   : > { %1455 = vmatpush.bf16.msra.mxu0 %v2789_v61  ;;  %1481 = vmatpush.bf16.msra.mxu2 %v2793_v1  ;;  %v2854_v61 = vld [vmem:[#allocation10 + $0x310] sm:$0xf0]  ;;  %v2958_v27 = vld [vmem:[#allocation10 + $0x3d8] sm:$0xf0]  ;;  %v3402_v31 = vld [vmem:[#allocation10 + $0x3d4] sm:$0xf0] }
  0xbf   : > { %1468 = vmatpush.bf16.msra.mxu1 %v2917_v6  ;;  %v2857_v1 = vor.u32 %v3375_v58, %v2854_v61  ;;  %v3404_v6 = vld [vmem:[#allocation10 + $0x3ec] sm:$0xf]  ;;  %v2812_v32 = vld [vmem:[#allocation10 + $0x2a8] sm:$0xf]  ;;  %v2942_v42 = vld [vmem:[#allocation10 + $0x3b8] sm:$0xf0] }
  0xc0   : > { %1495 = vmatpush.bf16.msra.mxu3 %v2905_v15  ;;  %v2977_v13 = vor.u32 %v3404_v6, %v2974_v9  ;;  %v2972_v15 = vld [vmem:[#allocation10 + $0x3e8] sm:$0xf]  ;;  %v3396_v41 = vld [vmem:[#allocation10 + $0x3ac] sm:$0xf]  ;;  %v2798_v56 = vld [vmem:[#allocation10 + $0x298] sm:$0xf0] }
  0xc1   : > { %962 = vmatmul.bf16.vlgmr.msrb.gmra.mxu0 %v506_v16  ;;  %988 = vmatmul.bf16.vlgmr.msrb.gmra.mxu2 %v506_v16  ;;  %v2900_v16 = vld [vmem:[#allocation10 + $0x360] sm:$0xf]  ;;  %v2945_v49 = vor.u32 %v3396_v41, %v2942_v42  ;;  %v2926_v61 = vld [vmem:[#allocation10 + $0x398] sm:$0xf0]  ;;  %v2924_v62 = vld [vmem:[#allocation10 + $0x388] sm:$0xf] }
  0xc2   : > { %1456 = vmatpush.bf16.msra.mxu0 %v2773_v10  ;;  %1482 = vmatpush.bf16.msra.mxu2 %v2777_v14  ;;  %v2852_v10 = vld [vmem:[#allocation10 + $0x300] sm:$0xf]  ;;  %v2780_v3 = vld [vmem:[#allocation10 + $0x268] sm:$0xf]  ;;  %v3358_v6 = vld [vmem:[#allocation10 + $0x274] sm:$0xf0] }
  0xc3   : > { %v2853_v14 = vor.u32 %v3377_v11, %v2852_v10  ;;  %v4334_v38 = vld [vmem:[%s4265_s20 + $0x8] sm:$0xff]  ;;  %v576_v10 = vperm.slane %v4321_v5, 2  ;;  %s3853_s6 = scalar_lea.hbm %s4618_s7, 48 }
  0xc4   : > { %1496 = vmatpush.bf16.msra.mxu3 %v2889_v50  ;;  %v2956_v50 = vld [vmem:[#allocation10 + $0x3c8] sm:$0xf]  ;;  %v4338_v43 = vpack.c.bf16 %v4334_v38, %v4334_v38  ;;  %p3855_p5 = scmp.lt.s32.totalorder %s3853_s6, %s3849_s8 }
  0xc6   : > { %1457 = vmatpush.bf16.msra.mxu0 %v2757_v25  ;;  %1483 = vmatpush.bf16.msra.mxu2 %v2761_v30  ;;  %v2830_v25 = vld [vmem:[#allocation10 + $0x2d8] sm:$0xf0]  ;;  %v2961_v30 = vor.u32 %v3400_v26, %v2958_v27  ;;  %p3856_p6 = por %p3855_p5, %p3854_p2 }
  0xc8   : > { %1497 = vmatpush.bf16.msra.mxu3 %v2873_v46  ;;  %v2940_v46 = vld [vmem:[#allocation10 + $0x3a8] sm:$0xf]  ;;  %p3857_p3 = pnand %p3856_p6, %p3852_p0 }
  0xca   : > { %1484 = vmatpush.bf16.msra.mxu2 %v2745_v45 }
  0xcc   : > { %1498 = vmatpush.bf16.msra.mxu3 %v2857_v1 }
  0xce   : > { %1485 = vmatpush.bf16.msra.mxu2 %v2729_v60  ;;  %v3392_v60 = vld [vmem:[#allocation10 + $0x38c] sm:$0xf] }
  0xcf   : > { %1499 = vmatmul.bf16.vlgmr.msra.gmra.mxu3 %v4338_v43  ;;  %v2929_v1 = vor.u32 %v3392_v60, %v2926_v61 }
  0xd0   : > { %1543 = vmatpush.bf16.msrb.mxu3 %v2977_v13  ;;  %v3388_v13 = vld [vmem:[#allocation10 + $0x36c] sm:$0xf] }
  0xd2   : > { %1530 = vmatpush.bf16.msrb.mxu2 %v2849_v8  ;;  %v2782_v8 = vld [vmem:[#allocation10 + $0x278] sm:$0xf0] }
  0xd4   : > { %1544 = vmatpush.bf16.msrb.mxu3 %v2961_v30  ;;  %v2766_v30 = vld [vmem:[#allocation10 + $0x258] sm:$0xf0] }
  0xd8   : > { %1545 = vmatpush.bf16.msrb.mxu3 %v2945_v49 }
  0xdc   : > { %1546 = vmatpush.bf16.msrb.mxu3 %v2929_v1 }
 0x10e   : > { %v4317_v17 = vpop.f32.mrf.mxu1 }
 0x112   : > { %v4319_v18 = vpop.f32.mrf.mxu3 }
 0x116   : > { %v926_v19 = vpop.f32.mrf.mxu1 }
 0x117   : > { %v3389_v19 = vld [vmem:[#allocation10 + $0x36c] sm:$0xf0] }
 0x118   : > { %v2901_v21 = vor.u32 %v3389_v19, %v2900_v16  ;;  %v3406_v16 = vld [vmem:[#allocation10 + $0x3f4] sm:$0xf0]  ;;  %v2828_v19 = vld [vmem:[#allocation10 + $0x2c8] sm:$0xf] }
 0x119   : > { %v2829_v24 = vor.u32 %v3370_v22, %v2828_v19  ;;  %v2908_v19 = vld [vmem:[#allocation10 + $0x368] sm:$0xf] }
 0x11a   : > { %v952_v40 = vpop.f32.mrf.mxu3  ;;  %1469 = vmatpush.bf16.msra.mxu1 %v2901_v21  ;;  %v2973_v21 = vor.u32 %v3406_v16, %v2972_v15  ;;  %v2781_v15 = vor.u32 %v3358_v6, %v2780_v3  ;;  %v2910_v16 = vld [vmem:[#allocation10 + $0x378] sm:$0xf0] }
 0x11b   : > { %v2741_v40 = vor.u32 %v3349_v37, %v2740_v36  ;;  %v3366_v36 = vld [vmem:[#allocation10 + $0x2b4] sm:$0xf0]  ;;  %v3364_v37 = vld [vmem:[#allocation10 + $0x2ac] sm:$0xf]  ;;  %v2734_v6 = vld [vmem:[#allocation10 + $0x218] sm:$0xf0] }
 0x11d   : > { %1458 = vmatpush.bf16.msra.mxu0 %v2741_v40  ;;  %v2814_v40 = vld [vmem:[#allocation10 + $0x2b8] sm:$0xf0] }
 0x11e   : > { %1470 = vmatpush.bf16.msra.mxu1 %v2885_v35  ;;  %v2957_v35 = vor.u32 %v3402_v31, %v2956_v50  ;;  %v2817_v47 = vor.u32 %v3364_v37, %v2814_v40  ;;  %v3384_v31 = vld [vmem:[#allocation10 + $0x34c] sm:$0xf]  ;;  %v2748_v40 = vld [vmem:[#allocation10 + $0x228] sm:$0xf] }
 0x122   : > { %1471 = vmatpush.bf16.msra.mxu1 %v2869_v52  ;;  %v2796_v52 = vld [vmem:[#allocation10 + $0x288] sm:$0xf] }
 0x126   : > { %1472 = vmatpush.bf16.msra.mxu1 %v2853_v14 }
 0x129   : > { %1473 = vmatmul.bf16.vlgmr.msra.gmra.mxu1 %v4338_v43 }
 0x12a   : > { %1517 = vmatpush.bf16.msrb.mxu1 %v2973_v21 }
 0x12c   : > { %v4326_v44 = vpop.f32.mrf.mxu1 }
 0x12e   : > { %v911_v29 = vpop.f32.mrf.mxu0  ;;  %1518 = vmatpush.bf16.msrb.mxu1 %v2957_v35 }
 0x12f   : > { %v912_v33 = vadd.f32 %v911_v29, %v574_v20 }
 0x131   : > { %v925_v39 = vadd.f32 %v4317_v17, %v912_v33  ;;  %v2725_v17 = vor.u32 %v3345_v54, %v2724_v53  ;;  %v3362_v53 = vld [vmem:[#allocation10 + $0x294] sm:$0xf0] }
 0x132   : > { %v4329_v12 = vpop.f32.mrf.mxu3  ;;  %v2797_v58 = vor.u32 %v3362_v53, %v2796_v52 }
 0x133   : > { %v2719_v51 = vmul.f32 -1.442695, %v925_v39  ;;  %1459 = vmatpush.bf16.msra.mxu0 %v2725_v17  ;;  %v2813_v39 = vor.u32 %v3366_v36, %v2812_v32  ;;  %v3360_v17 = vld [vmem:[#allocation10 + $0x28c] sm:$0xf]  ;;  %v2894_v32 = vld [vmem:[#allocation10 + $0x358] sm:$0xf0] }
 0x134   : > { %v937_v55 = vpop.f32.mrf.mxu2  ;;  %v978_v23 = vpop.f32.mrf.mxu1  ;;  %v2897_v42 = vor.u32 %v3384_v31, %v2894_v32  ;;  %v3096_v32 = vld [vmem:[#allocation10 + $0x4e0] sm:$0xf] }
 0x135   : > { %3641 = vpow2.f32 %v2719_v51  ;;  %v938_v59 = vadd.f32 %v937_v55, %v575_v34  ;;  %v3398_v51 = vld [vmem:[#allocation10 + $0x3b4] sm:$0xf0]  ;;  %v2913_v23 = vor.u32 %v3388_v13, %v2910_v16 }
 0x136   : > { %v913_v0 = vpop.f32.mrf.mxu0  ;;  %v2941_v55 = vor.u32 %v3398_v51, %v2940_v46  ;;  %v3350_v46 = vld [vmem:[#allocation10 + $0x234] sm:$0xf0] }
 0x137   : > { %v951_v7 = vadd.f32 %v4319_v18, %v938_v59  ;;  %1504 = vmatpush.bf16.msrb.mxu0 %v2845_v2  ;;  %v3368_v18 = vld [vmem:[#allocation10 + $0x2cc] sm:$0xf]  ;;  %v2801_v59 = vor.u32 %v3360_v17, %v2798_v56  ;;  %v577_v0 = vperm.slane %v4321_v5, 3  ;;  %v3394_v2 = vld [vmem:[#allocation10 + $0x394] sm:$0xf0]  ;;  %1547 = vmatpush.bf16.msrb.mxu3 %v2913_v23 }
 0x138   : > { %v2833_v29 = vor.u32 %v3368_v18, %v2830_v25  ;;  %1519 = vmatpush.bf16.msrb.mxu1 %v2941_v55  ;;  %v2925_v4 = vor.u32 %v3394_v2, %v2924_v62  ;;  %v3354_v25 = vld [vmem:[#allocation10 + $0x254] sm:$0xf0]  ;;  %v2878_v55 = vld [vmem:[#allocation10 + $0x338] sm:$0xf0]  ;;  %v3208_v56 = vld [vmem:[#allocation10 + $0x5c0] sm:$0xf] }
 0x139   : > { %v2720_v20 = vmul.f32 -1.442695, %v951_v7  ;;  %v3356_v7 = vld [vmem:[#allocation10 + $0x26c] sm:$0xf]  ;;  %v3378_v16 = vld [vmem:[#allocation10 + $0x314] sm:$0xf0] }
 0x13a   : > { %1531 = vmatpush.bf16.msrb.mxu2 %v2833_v29  ;;  %v1004_v54 = vpop.f32.mrf.mxu3  ;;  %v2785_v18 = vor.u32 %v3356_v7, %v2782_v8  ;;  %v3352_v29 = vld [vmem:[#allocation10 + $0x24c] sm:$0xf] }
 0x13b   : > { %v3642_v28 = vpop.eup %3641  ;;  %3643 = vpow2.f32 %v2720_v20  ;;  %1505 = vmatpush.bf16.msrb.mxu0 %v2829_v24  ;;  %v3390_v20 = vld [vmem:[#allocation10 + $0x374] sm:$0xf0]  ;;  %v2764_v24 = vld [vmem:[#allocation10 + $0x248] sm:$0xf]  ;;  %v2769_v37 = vor.u32 %v3352_v29, %v2766_v30  ;;  %v3380_v54 = vld [vmem:[#allocation10 + $0x32c] sm:$0xf]  ;;  %1548 = vmatpush.bf16.msrb.mxu3 %v2897_v42 }
 0x13c   : > { %v4331_v33 = vadd.f32 1.0, %v3642_v28  ;;  %v939_v34 = vpop.f32.mrf.mxu2  ;;  %1520 = vmatpush.bf16.msrb.mxu1 %v2925_v4  ;;  %v2909_v28 = vor.u32 %v3390_v20, %v2908_v19  ;;  %v2765_v36 = vor.u32 %v3354_v25, %v2764_v24  ;;  %v2881_v3 = vor.u32 %v3380_v54, %v2878_v55  ;;  %v3344_v4 = vld [vmem:[#allocation10 + $0x20c] sm:$0xf]  ;;  %v3469_v42 = vld [vmem:[#allocation10 + $0x5ec] sm:$0xf0] }
 0x13d   : > { %v2892_v34 = vld [vmem:[#allocation10 + $0x348] sm:$0xf]  ;;  %v3210_v54 = vld [vmem:[#allocation10 + $0x5d0] sm:$0xf0] }
 0x13e   : > { %3645 = vrcp.f32 %v4331_v33  ;;  %v963_v45 = vpop.f32.mrf.mxu0  ;;  %1532 = vmatpush.bf16.msrb.mxu2 %v2817_v47  ;;  %v1019_v21 = vand.u32 2147483647, %v4331_v33  ;;  %v1021_v27 = vand.u32 2147483648, %v4331_v33  ;;  %vm1015_vm0 = vweird.f32 %v4331_v33  ;;  %v2750_v47 = vld [vmem:[#allocation10 + $0x238] sm:$0xf0] }
 0x13f   : > { %1506 = vmatpush.bf16.msrb.mxu0 %v2813_v39  ;;  %v964_v50 = vadd.f32 %v963_v45, %v576_v10  ;;  %v3386_v39 = vld [vmem:[#allocation10 + $0x354] sm:$0xf0]  ;;  %v3348_v45 = vld [vmem:[#allocation10 + $0x22c] sm:$0xf]  ;;  %1549 = vmatpush.bf16.msrb.mxu3 %v2881_v3  ;;  %v3192_v3 = vld [vmem:[#allocation10 + $0x5a0] sm:$0xf] }
 0x140   : > { %1521 = vmatpush.bf16.msrb.mxu1 %v2909_v28  ;;  %v2893_v53 = vor.u32 %v3386_v39, %v2892_v34  ;;  %vm1020_vm3 = vcmp.eq.f32.partialorder %v1019_v21, 8.507059e+37  ;;  %v2753_v62 = vor.u32 %v3348_v45, %v2750_v47  ;;  %v3376_v10 = vld [vmem:[#allocation10 + $0x30c] sm:$0xf]  ;;  %v2737_v21 = vor.u32 %v3344_v4, %v2734_v6  ;;  %v3437_v34 = vld [vmem:[#allocation10 + $0x4ec] sm:$0xf0] }
 0x141   : > { %v3644_v57 = vpop.eup %3643  ;;  %v977_v17 = vadd.f32 %v4326_v44, %v964_v50  ;;  %v2749_v44 = vor.u32 %v3350_v46, %v2748_v40  ;;  %v3226_v39 = vld [vmem:[#allocation10 + $0x5f0] sm:$0xf0]  ;;  %v3080_v45 = vld [vmem:[#allocation10 + $0x4c0] sm:$0xf]  ;;  %v3433_v47 = vld [vmem:[#allocation10 + $0x4cc] sm:$0xf0] }
 0x142   : > { %v4343_v63 = vadd.f32 1.0, %v3644_v57  ;;  %1533 = vmatpush.bf16.msrb.mxu2 %v2801_v59  ;;  %v1022_v57 = vor.u32 1.1754944e-38, %v1021_v27  ;;  %v3382_v59 = vld [vmem:[#allocation10 + $0x334] sm:$0xf0]  ;;  %v3461_v4 = vld [vmem:[#allocation10 + $0x5ac] sm:$0xf0] }
 0x143   : > { %1507 = vmatpush.bf16.msrb.mxu0 %v2797_v58  ;;  %v3193_v6 = vor.u32 %v3461_v4, %v3192_v3  ;;  %v2984_v3 = vld [vmem:[#allocation10 + $0x400] sm:$0xf]  ;;  %v3409_v4 = vld [vmem:[#allocation10 + $0x40c] sm:$0xf0] }
 0x144   : > { %v4346_v9 = vpop.eup %3645  ;;  %3647 = vrcp.f32 %v4343_v63  ;;  %v989_v11 = vpop.f32.mrf.mxu2  ;;  %vm1034_vm4 = vweird.f32 %v4343_v63  ;;  %v1040_v1 = vand.u32 2147483648, %v4343_v63  ;;  %1522 = vmatpush.bf16.msrb.mxu1 %v2893_v53  ;;  %v1038_v13 = vand.u32 2147483647, %v4343_v63  ;;  %v3463_v53 = vld [vmem:[#allocation10 + $0x5c4] sm:$0xf] }
 0x145   : > { %v1011_v14 = vmul.f32 %v4346_v9, %v4331_v33  ;;  %v990_v5 = vadd.f32 %v989_v11, %v577_v0  ;;  %vm1016_vm1 = vweird.f32 %v4346_v9  ;;  %v2732_v0 = vld [vmem:[#allocation10 + $0x208] sm:$0xf]  ;;  %v3346_v33 = vld [vmem:[#allocation10 + $0x214] sm:$0xf0]  ;;  %v2862_v11 = vld [vmem:[#allocation10 + $0x318] sm:$0xf0] }
 0x146   : > { %v965_v22 = vpop.f32.mrf.mxu0  ;;  %1534 = vmatpush.bf16.msrb.mxu2 %v2785_v18  ;;  %vm4365_vm2 = vmor %vm1015_vm0, %vm1016_vm1  ;;  %v1041_v18 = vor.u32 1.1754944e-38, %v1040_v1  ;;  %vm1039_vm7 = vcmp.eq.f32.partialorder %v1038_v13, 8.507059e+37  ;;  %v3455_v13 = vld [vmem:[#allocation10 + $0x584] sm:$0xf] }
 0x147   : > { %v1012_v26 = vsub.f32 1.0, %v1011_v14  ;;  %1508 = vmatpush.bf16.msrb.mxu0 %v2781_v15  ;;  %v1003_v51 = vadd.f32 %v4329_v12, %v990_v5  ;;  %v2876_v12 = vld [vmem:[#allocation10 + $0x328] sm:$0xf]  ;;  %v2733_v14 = vor.u32 %v3346_v33, %v2732_v0  ;;  %v2865_v22 = vor.u32 %v3376_v10, %v2862_v11  ;;  %v3459_v0 = vld [vmem:[#allocation10 + $0x5a4] sm:$0xf] }
 0x148   : > { %v2860_v15 = vld [vmem:[#allocation10 + $0x308] sm:$0xf]  ;;  %v3194_v33 = vld [vmem:[#allocation10 + $0x5b0] sm:$0xf0]  ;;  %v3423_v10 = vld [vmem:[#allocation10 + $0x484] sm:$0xf] }
 0x149   : > { %v1013_v35 = vmul.f32 %v4346_v9, %v1012_v26  ;;  %v2861_v24 = vor.u32 %v3378_v16, %v2860_v15  ;;  %1550 = vmatpush.bf16.msrb.mxu3 %v2865_v22  ;;  %v3050_v11 = vld [vmem:[#allocation10 + $0x490] sm:$0xf0]  ;;  %v3176_v16 = vld [vmem:[#allocation10 + $0x580] sm:$0xf] }
 0x14a   : > { %v3648_v41 = vpop.eup %3647  ;;  %1535 = vmatpush.bf16.msrb.mxu2 %v2769_v37  ;;  %v3098_v37 = vld [vmem:[#allocation10 + $0x4f0] sm:$0xf0] }
 0x14b   : > { %v1030_v49 = vmul.f32 %v3648_v41, %v4343_v63  ;;  %v1014_v52 = vadd.f32 %v4346_v9, %v1013_v35  ;;  %1509 = vmatpush.bf16.msrb.mxu0 %v2765_v36  ;;  %vm1035_vm5 = vweird.f32 %v3648_v41  ;;  %v3435_v35 = vld [vmem:[#allocation10 + $0x4e4] sm:$0xf]  ;;  %v3097_v36 = vor.u32 %v3437_v34, %v3096_v32  ;;  %v3178_v15 = vld [vmem:[#allocation10 + $0x590] sm:$0xf0]  ;;  %v3453_v32 = vld [vmem:[#allocation10 + $0x56c] sm:$0xf0] }
 0x14c   : > { %v991_v58 = vpop.f32.mrf.mxu2  ;;  %vm1036_vm6 = vmor %vm1034_vm4, %vm1035_vm5  ;;  %1551 = vmatmul.bf16.vlgmr.msrb.gmra.mxu3 %v4338_v43 }
 0x14d   : > { %v1031_v60 = vsub.f32 1.0, %v1030_v49  ;;  %v1018_v61 = vsel %vm4365_vm2, %v4346_v9, %v1014_v52  ;;  %v2877_v9 = vor.u32 %v3382_v59, %v2876_v12  ;;  %v3431_v49 = vld [vmem:[#allocation10 + $0x4c4] sm:$0xf]  ;;  %v3082_v52 = vld [vmem:[#allocation10 + $0x4d0] sm:$0xf0] }
 0x14e   : > { %v1023_v2 = vsel %vm1020_vm3, %v1022_v57, %v1018_v61  ;;  %1536 = vmatpush.bf16.msrb.mxu2 %v2753_v62  ;;  %v3085_v55 = vor.u32 %v3431_v49, %v3082_v52  ;;  %v3465_v57 = vld [vmem:[#allocation10 + $0x5cc] sm:$0xf0]  ;;  %v3064_v59 = vld [vmem:[#allocation10 + $0x4a0] sm:$0xf]  ;;  %v3427_v61 = vld [vmem:[#allocation10 + $0x4a4] sm:$0xf] }
 0x14f   : > { %v1032_v7 = vmul.f32 %v3648_v41, %v1031_v60  ;;  %v1044_v8 = vmul.f32 %v1023_v2, %v1003_v51  ;;  %1510 = vmatpush.bf16.msrb.mxu0 %v2749_v44  ;;  %1523 = vmatpush.bf16.msrb.mxu1 %v2877_v9  ;;  %v3081_v51 = vor.u32 %v3433_v47, %v3080_v45  ;;  %v3429_v60 = vld [vmem:[#allocation10 + $0x4ac] sm:$0xf0]  ;;  %v3066_v62 = vld [vmem:[#allocation10 + $0x4b0] sm:$0xf0]  ;;  %v3144_v49 = vld [vmem:[#allocation10 + $0x540] sm:$0xf] }
 0x150   : > { %v3209_v58 = vor.u32 %v3465_v57, %v3208_v56  ;;  %v3065_v44 = vor.u32 %v3429_v60, %v3064_v59  ;;  %v3069_v1 = vor.u32 %v3427_v61, %v3066_v62  ;;  %v3197_v2 = vor.u32 %v3459_v0, %v3194_v33  ;;  %v3411_v56 = vld [vmem:[#allocation10 + $0x424] sm:$0xf]  ;;  %v3002_v59 = vld [vmem:[#allocation10 + $0x430] sm:$0xf0]  ;;  %v3128_v0 = vld [vmem:[#allocation10 + $0x520] sm:$0xf] }
 0x151   : > { %v1045_v19 = vadd.f32 %v1044_v8, %v977_v17  ;;  %v1033_v20 = vadd.f32 %v3648_v41, %v1032_v7  ;;  %v3213_v17 = vor.u32 %v3463_v53, %v3210_v54  ;;  %v3048_v7 = vld [vmem:[#allocation10 + $0x480] sm:$0xf]  ;;  %v3425_v8 = vld [vmem:[#allocation10 + $0x48c] sm:$0xf0]  ;;  %v3443_v60 = vld [vmem:[#allocation10 + $0x524] sm:$0xf] }
 0x152   : > { %1537 = vmatpush.bf16.msrb.mxu2 %v2737_v21  ;;  %v4384_v31 = vpop.f32.mrf.mxu3  ;;  %v3049_v9 = vor.u32 %v3425_v8, %v3048_v7  ;;  %v3181_v21 = vor.u32 %v3455_v13, %v3178_v15  ;;  %v3130_v61 = vld [vmem:[#allocation10 + $0x530] sm:$0xf0]  ;;  %v3445_v33 = vld [vmem:[#allocation10 + $0x52c] sm:$0xf0]  ;;  %v2985_v7 = vor.u32 %v3409_v4, %v2984_v3  ;;  %v3407_v8 = vld [vmem:[#allocation10 + $0x404] sm:$0xf] }
 0x153   : > { %3649 = vtanh.f32 %v1045_v19  ;;  %v1037_v23 = vsel %vm1036_vm6, %v3648_v41, %v1033_v20  ;;  %1511 = vmatpush.bf16.msrb.mxu0 %v2733_v14  ;;  %1524 = vmatpush.bf16.msrb.mxu1 %v2861_v24  ;;  %v3224_v41 = vld [vmem:[#allocation10 + $0x5e0] sm:$0xf]  ;;  %v3053_v14 = vor.u32 %v3423_v10, %v3050_v11  ;;  %v3457_v19 = vld [vmem:[#allocation10 + $0x58c] sm:$0xf0]  ;;  %v4386_v20 = vld [vmem:[#allocation11 + $0x4] sm:$0xf]  ;;  %v3133_v62 = vor.u32 %v3443_v60, %v3130_v61 }
 0x154   : > { %v1042_v25 = vsel %vm1039_vm7, %v1041_v18, %v1037_v23  ;;  %v3225_v46 = vor.u32 %v3469_v42, %v3224_v41  ;;  %v3177_v22 = vor.u32 %v3457_v19, %v3176_v16  ;;  %v3032_v23 = vld [vmem:[#allocation10 + $0x460] sm:$0xf]  ;;  %v3421_v24 = vld [vmem:[#allocation10 + $0x46c] sm:$0xf0]  ;;  %v1124_v34 = vperm.slane %v4386_v20, 0 }
 0x155   : > { %v1047_v5 = vsub.f32 1.0, %v1042_v25  ;;  %v1049_v27 = vmul.f32 %v1042_v25, %v4288_v48  ;;  %v3467_v48 = vld [vmem:[#allocation10 + $0x5e4] sm:$0xf]  ;;  %v3146_v42 = vld [vmem:[#allocation10 + $0x550] sm:$0xf0]  ;;  %v1125_v53 = vperm.slane %v4386_v20, 1 }
 0x156   : > { %1525 = vmatmul.bf16.vlgmr.msrb.gmra.mxu1 %v4338_v43  ;;  %v3101_v43 = vor.u32 %v3435_v35, %v3098_v37  ;;  %v3229_v40 = vor.u32 %v3467_v48, %v3226_v39  ;;  %v3419_v25 = vld [vmem:[#allocation10 + $0x464] sm:$0xf]  ;;  %v3417_v37 = vld [vmem:[#allocation10 + $0x44c] sm:$0xf0]  ;;  %v3104_v15 = vld [vmem:[#allocation10 + $0x4e8] sm:$0xf] }
 0x157   : > { %2015 = vmatpush.bf16.msra.mxu1 %v3225_v46  ;;  %v3415_v48 = vld [vmem:[#allocation10 + $0x444] sm:$0xf]  ;;  %v3438_v16 = vld [vmem:[#allocation10 + $0x4f4] sm:$0xf0]  ;;  %v3202_v60 = vld [vmem:[#allocation10 + $0x5b8] sm:$0xf0] }
 0x158   : > { %2041 = vmatpush.bf16.msra.mxu3 %v3229_v40  ;;  %v3018_v40 = vld [vmem:[#allocation10 + $0x450] sm:$0xf0]  ;;  %v3447_v41 = vld [vmem:[#allocation10 + $0x544] sm:$0xf]  ;;  %v3426_v3 = vld [vmem:[#allocation10 + $0x494] sm:$0xf0] }
 0x159   : > { %v3650_v26 = vpop.eup %3649  ;;  %v3021_v45 = vor.u32 %v3415_v48, %v3018_v40  ;;  %v3149_v47 = vor.u32 %v3447_v41, %v3146_v42  ;;  %v3434_v48 = vld [vmem:[#allocation10 + $0x4d4] sm:$0xf0]  ;;  %v3090_v40 = vld [vmem:[#allocation10 + $0x4d8] sm:$0xf0]  ;;  %v3464_v41 = vld [vmem:[#allocation10 + $0x5cc] sm:$0xf] }
 0x15a   : > { %v1048_v63 = vmul.f32 %v3650_v26, %v1047_v5  ;;  %v1502_v12 = vpop.f32.mrf.mxu3  ;;  %v3033_v5 = vor.u32 %v3421_v24, %v3032_v23  ;;  %v3034_v26 = vld [vmem:[#allocation10 + $0x470] sm:$0xf0]  ;;  %v3436_v23 = vld [vmem:[#allocation10 + $0x4ec] sm:$0xf]  ;;  %v3106_v24 = vld [vmem:[#allocation10 + $0x4f8] sm:$0xf0] }
 0x15b   : > { %2016 = vmatpush.bf16.msra.mxu1 %v3209_v58  ;;  %v3218_v42 = vld [vmem:[#allocation10 + $0x5d8] sm:$0xf0] }
 0x15c   : > { %v1050_v28 = vadd.f32 %v1049_v27, %v1048_v63  ;;  %2042 = vmatpush.bf16.msra.mxu3 %v3213_v17  ;;  %v3451_v63 = vld [vmem:[#allocation10 + $0x564] sm:$0xf]  ;;  %v3162_v27 = vld [vmem:[#allocation10 + $0x570] sm:$0xf0]  ;;  %v3413_v17 = vld [vmem:[#allocation10 + $0x42c] sm:$0xf0] }
 0x15e   : > { %1051 = vst [vmem:[%s4265_s20] sm:$0xff] %v1050_v28  ;;  %v1054_v29 = vpack.c.bf16 %v1050_v28, %v1050_v28  ;;  %v3037_v28 = vor.u32 %v3419_v25, %v3034_v26  ;;  %v3468_v25 = vld [vmem:[#allocation10 + $0x5ec] sm:$0xf]  ;;  %v3109_v26 = vor.u32 %v3436_v23, %v3106_v24  ;;  %v3042_v24 = vld [vmem:[#allocation10 + $0x478] sm:$0xf0] }
 0x15f   : > { %2017 = vmatpush.bf16.msra.mxu1 %v3193_v6  ;;  %v3420_v23 = vld [vmem:[#allocation10 + $0x46c] sm:$0xf] }
 0x160   : > { %1460 = vmatmul.bf16.vlgmr.msra.gmra.mxu0 %v1054_v29  ;;  %1486 = vmatmul.bf16.vlgmr.msra.gmra.mxu2 %v1054_v29 }
 0x161   : > { %2002 = vmatpush.bf16.msra.mxu0 %v3097_v36  ;;  %2028 = vmatpush.bf16.msra.mxu2 %v3101_v43  ;;  %v3016_v36 = vld [vmem:[#allocation10 + $0x440] sm:$0xf] }
 0x162   : > { %2043 = vmatpush.bf16.msra.mxu3 %v3197_v2  ;;  %v3017_v43 = vor.u32 %v3417_v37, %v3016_v36  ;;  %v3129_v2 = vor.u32 %v3445_v33, %v3128_v0 }
 0x163   : > { %2018 = vmatpush.bf16.msra.mxu1 %v3177_v22  ;;  %v3105_v22 = vor.u32 %v3438_v16, %v3104_v15  ;;  %v3458_v16 = vld [vmem:[#allocation10 + $0x594] sm:$0xf0] }
 0x165   : > { %2003 = vmatpush.bf16.msra.mxu0 %v3081_v51  ;;  %2029 = vmatpush.bf16.msra.mxu2 %v3085_v55  ;;  %v3449_v51 = vld [vmem:[#allocation10 + $0x54c] sm:$0xf0]  ;;  %v3000_v55 = vld [vmem:[#allocation10 + $0x420] sm:$0xf] }
 0x166   : > { %2044 = vmatpush.bf16.msra.mxu3 %v3181_v21  ;;  %v3145_v54 = vor.u32 %v3449_v51, %v3144_v49  ;;  %v3001_v12 = vor.u32 %v3413_v17, %v3000_v55  ;;  %v3216_v49 = vld [vmem:[#allocation10 + $0x5c8] sm:$0xf]  ;;  %v3466_v51 = vld [vmem:[#allocation10 + $0x5d4] sm:$0xf0] }
 0x167   : > { %v3217_v55 = vor.u32 %v3466_v51, %v3216_v49  ;;  %v3430_v17 = vld [vmem:[#allocation10 + $0x4b4] sm:$0xf0]  ;;  %v3154_v49 = vld [vmem:[#allocation10 + $0x558] sm:$0xf0]  ;;  %v3152_v51 = vld [vmem:[#allocation10 + $0x548] sm:$0xf] }
 0x169   : > { %2004 = vmatpush.bf16.msra.mxu0 %v3065_v44  ;;  %2030 = vmatpush.bf16.msra.mxu2 %v3069_v1  ;;  %v3005_v44 = vor.u32 %v3411_v56, %v3002_v59  ;;  %v3428_v56 = vld [vmem:[#allocation10 + $0x4ac] sm:$0xf] }
 0x16a   : > { %v3460_v59 = vld [vmem:[#allocation10 + $0x5ac] sm:$0xf] }
 0x16b   : > { %v3205_v33 = vor.u32 %v3460_v59, %v3202_v60 }
 0x16d   : > { %2005 = vmatpush.bf16.msra.mxu0 %v3049_v9  ;;  %2031 = vmatpush.bf16.msra.mxu2 %v3053_v14  ;;  %v3439_v9 = vld [vmem:[#allocation10 + $0x504] sm:$0xf]  ;;  %v3114_v14 = vld [vmem:[#allocation10 + $0x510] sm:$0xf0] }
 0x16e   : > { %v3117_v21 = vor.u32 %v3439_v9, %v3114_v14 }
 0x170   : > { %1512 = vmatmul.bf16.vlgmr.msrb.gmra.mxu0 %v1054_v29  ;;  %1538 = vmatmul.bf16.vlgmr.msrb.gmra.mxu2 %v1054_v29  ;;  %v3165_v29 = vor.u32 %v3451_v63, %v3162_v27  ;;  %v3234_v63 = vld [vmem:[#allocation10 + $0x5f8] sm:$0xf0]  ;;  %v3112_v27 = vld [vmem:[#allocation10 + $0x500] sm:$0xf] }
 0x171   : > { %2006 = vmatpush.bf16.msra.mxu0 %v3033_v5  ;;  %2032 = vmatpush.bf16.msra.mxu2 %v3037_v28  ;;  %v3441_v28 = vld [vmem:[#allocation10 + $0x50c] sm:$0xf0] }
 0x172   : > { %2045 = vmatpush.bf16.msra.mxu3 %v3165_v29  ;;  %v3237_v29 = vor.u32 %v3468_v25, %v3234_v63 }
 0x175   : > { %2007 = vmatpush.bf16.msra.mxu0 %v3017_v43  ;;  %2033 = vmatpush.bf16.msra.mxu2 %v3021_v45  ;;  %v3432_v43 = vld [vmem:[#allocation10 + $0x4cc] sm:$0xf] }
 0x176   : > { %2046 = vmatpush.bf16.msra.mxu3 %v3149_v47  ;;  %v3093_v45 = vor.u32 %v3432_v43, %v3090_v40  ;;  %v3221_v47 = vor.u32 %v3464_v41, %v3218_v42  ;;  %v3024_v43 = vld [vmem:[#allocation10 + $0x448] sm:$0xf]  ;;  %v3416_v42 = vld [vmem:[#allocation10 + $0x44c] sm:$0xf] }
 0x179   : > { %2008 = vmatpush.bf16.msra.mxu0 %v3001_v12  ;;  %2034 = vmatpush.bf16.msra.mxu2 %v3005_v44  ;;  %v3074_v12 = vld [vmem:[#allocation10 + $0x4b8] sm:$0xf0] }
 0x17a   : > { %2047 = vmatpush.bf16.msra.mxu3 %v3133_v62  ;;  %v3200_v62 = vld [vmem:[#allocation10 + $0x5a8] sm:$0xf]  ;;  %v3077_v0 = vor.u32 %v3428_v56, %v3074_v12 }
 0x17b   : > { %v3008_v56 = vld [vmem:[#allocation10 + $0x428] sm:$0xf] }
 0x17d   : > { %2009 = vmatpush.bf16.msra.mxu0 %v2985_v7  ;;  %v3424_v7 = vld [vmem:[#allocation10 + $0x48c] sm:$0xf] }
 0x17e   : > { %2048 = vmatpush.bf16.msra.mxu3 %v3117_v21 }
 0x181   : > { %2054 = vmatpush.bf16.msrb.mxu0 %v3105_v22  ;;  %v3422_v22 = vld [vmem:[#allocation10 + $0x474] sm:$0xf0] }
 0x182   : > { %2093 = vmatpush.bf16.msrb.mxu3 %v3237_v29 }
 0x186   : > { %2094 = vmatpush.bf16.msrb.mxu3 %v3221_v47  ;;  %v3448_v47 = vld [vmem:[#allocation10 + $0x54c] sm:$0xf] }
 0x187   : > { %v3157_v60 = vor.u32 %v3448_v47, %v3154_v49 }
 0x18a   : > { %2095 = vmatpush.bf16.msrb.mxu3 %v3205_v33 }
 0x1a6   : > { %v4382_v30 = vpop.f32.mrf.mxu1 }
 0x1ae   : > { %v1476_v50 = vpop.f32.mrf.mxu1 }
 0x1af   : > { %v3160_v50 = vld [vmem:[#allocation10 + $0x560] sm:$0xf] }
 0x1b0   : > { %v3161_v35 = vor.u32 %v3453_v32, %v3160_v50  ;;  %v3113_v50 = vor.u32 %v3441_v28, %v3112_v27  ;;  %v3232_v32 = vld [vmem:[#allocation10 + $0x5e8] sm:$0xf]  ;;  %v3452_v27 = vld [vmem:[#allocation10 + $0x56c] sm:$0xf] }
 0x1b2   : > { %2019 = vmatpush.bf16.msra.mxu1 %v3161_v35  ;;  %v3088_v35 = vld [vmem:[#allocation10 + $0x4c8] sm:$0xf] }
 0x1b6   : > { %2020 = vmatpush.bf16.msra.mxu1 %v3145_v54 }
 0x1ba   : > { %2021 = vmatpush.bf16.msra.mxu1 %v3129_v2  ;;  %v3056_v2 = vld [vmem:[#allocation10 + $0x488] sm:$0xf] }
 0x1be   : > { %2022 = vmatpush.bf16.msra.mxu1 %v3113_v50  ;;  %v3170_v50 = vld [vmem:[#allocation10 + $0x578] sm:$0xf0] }
 0x1cf   : > { %v4391_v39 = vpop.f32.mrf.mxu3 }
 0x1d3   : > { %v4388_v18 = vpop.f32.mrf.mxu1 }
 0x1d7   : > { %v1554_v11 = vpop.f32.mrf.mxu3 }
 0x1d8   : > { %v3186_v11 = vld [vmem:[#allocation10 + $0x598] sm:$0xf0] }
 0x1db   : > { %v1528_v57 = vpop.f32.mrf.mxu1 }
 0x1dc   : > { %v4399_v57 = vld [vmem:[%s4265_s20 + $0x10] sm:$0xff] }
 0x1dd   : > { %v1461_v46 = vpop.f32.mrf.mxu0  ;;  %v4403_v61 = vpack.c.bf16 %v4399_v57, %v4399_v57 }
 0x1de   : > { %v1462_v52 = vadd.f32 %v1461_v46, %v1124_v34  ;;  %v3470_v34 = vld [vmem:[#allocation10 + $0x5f4] sm:$0xf0] }
 0x1df   : > { %v3233_v37 = vor.u32 %v3470_v34, %v3232_v32  ;;  %2049 = vmatmul.bf16.vlgmr.msra.gmra.mxu3 %v4403_v61  ;;  %2023 = vmatmul.bf16.vlgmr.msra.gmra.mxu1 %v4403_v61  ;;  %v3168_v32 = vld [vmem:[#allocation10 + $0x568] sm:$0xf]  ;;  %v3454_v34 = vld [vmem:[#allocation10 + $0x574] sm:$0xf0] }
 0x1e0   : > { %v1475_v58 = vadd.f32 %v4382_v30, %v1462_v52  ;;  %v2986_v30 = vld [vmem:[#allocation10 + $0x410] sm:$0xf0]  ;;  %v3072_v52 = vld [vmem:[#allocation10 + $0x4a8] sm:$0xf]  ;;  %v3169_v41 = vor.u32 %v3454_v34, %v3168_v32 }
 0x1e1   : > { %v2989_v13 = vor.u32 %v3407_v8, %v2986_v30  ;;  %2067 = vmatpush.bf16.msrb.mxu1 %v3233_v37  ;;  %v3058_v8 = vld [vmem:[#allocation10 + $0x498] sm:$0xf0]  ;;  %v3045_v37 = vor.u32 %v3420_v23, %v3042_v24  ;;  %v3408_v24 = vld [vmem:[#allocation10 + $0x40c] sm:$0xf] }
 0x1e2   : > { %v2978_v1 = vmul.f32 -1.442695, %v1475_v58  ;;  %v3073_v58 = vor.u32 %v3430_v17, %v3072_v52  ;;  %v3061_v9 = vor.u32 %v3424_v7, %v3058_v8  ;;  %v3450_v17 = vld [vmem:[#allocation10 + $0x554] sm:$0xf0] }
 0x1e3   : > { %v1487_v6 = vpop.f32.mrf.mxu2  ;;  %2035 = vmatpush.bf16.msra.mxu2 %v2989_v13  ;;  %v3184_v13 = vld [vmem:[#allocation10 + $0x588] sm:$0xf] }
 0x1e4   : > { %3651 = vpow2.f32 %v2978_v1  ;;  %v1488_v10 = vadd.f32 %v1487_v6, %v1125_v53  ;;  %v3462_v1 = vld [vmem:[#allocation10 + $0x5b4] sm:$0xf0]  ;;  %v3057_v6 = vor.u32 %v3426_v3, %v3056_v2  ;;  %v3185_v21 = vor.u32 %v3458_v16, %v3184_v13  ;;  %v3444_v3 = vld [vmem:[#allocation10 + $0x52c] sm:$0xf] }
 0x1e5   : > { %v1463_v19 = vpop.f32.mrf.mxu0  ;;  %2068 = vmatpush.bf16.msrb.mxu1 %v3217_v55  ;;  %v3201_v4 = vor.u32 %v3462_v1, %v3200_v62  ;;  %v3412_v62 = vld [vmem:[#allocation10 + $0x42c] sm:$0xf]  ;;  %v3153_v2 = vor.u32 %v3450_v17, %v3152_v51  ;;  %v3410_v16 = vld [vmem:[#allocation10 + $0x414] sm:$0xf0]  ;;  %v3477_v17 = vld [vmem:[#allocation13 + $0x30] sm:$0xff] }
 0x1e6   : > { %v1501_v5 = vadd.f32 %v4384_v31, %v1488_v10  ;;  %v3089_v31 = vor.u32 %v3434_v48, %v3088_v35  ;;  %v3456_v10 = vld [vmem:[#allocation10 + $0x58c] sm:$0xf]  ;;  %v3040_v19 = vld [vmem:[#allocation10 + $0x468] sm:$0xf]  ;;  %v3173_v48 = vor.u32 %v3452_v27, %v3170_v50  ;;  %v3122_v27 = vld [vmem:[#allocation10 + $0x518] sm:$0xf0] }
 0x1e7   : > { %2080 = vmatpush.bf16.msrb.mxu2 %v3109_v26  ;;  %v3189_v15 = vor.u32 %v3456_v10, %v3186_v11  ;;  %v1127_v26 = vperm.slane %v4386_v20, 3  ;;  %v3041_v29 = vor.u32 %v3422_v22, %v3040_v19  ;;  %v3442_v50 = vld [vmem:[#allocation10 + $0x514] sm:$0xf0] }
 0x1e8   : > { %v2979_v36 = vmul.f32 -1.442695, %v1501_v5  ;;  %2055 = vmatpush.bf16.msrb.mxu0 %v3089_v31  ;;  %v1126_v5 = vperm.slane %v4386_v20, 2  ;;  %v3418_v31 = vld [vmem:[#allocation10 + $0x454] sm:$0xf0] }
 0x1e9   : > { %2069 = vmatpush.bf16.msrb.mxu1 %v3201_v4  ;;  %2096 = vmatpush.bf16.msrb.mxu3 %v3189_v15  ;;  %v3138_v4 = vld [vmem:[#allocation10 + $0x538] sm:$0xf0]  ;;  %v2992_v15 = vld [vmem:[#allocation10 + $0x408] sm:$0xf] }
 0x1ea   : > { %v3652_v46 = vpop.eup %3651  ;;  %3653 = vpow2.f32 %v2979_v36  ;;  %v3141_v23 = vor.u32 %v3444_v3, %v3138_v4 }
 0x1eb   : > { %v4396_v53 = vadd.f32 1.0, %v3652_v46  ;;  %v1489_v54 = vpop.f32.mrf.mxu2  ;;  %2081 = vmatpush.bf16.msrb.mxu2 %v3093_v45  ;;  %v3026_v46 = vld [vmem:[#allocation10 + $0x458] sm:$0xf0]  ;;  %v3025_v45 = vor.u32 %v3418_v31, %v3024_v43 }
 0x1ec   : > { %2056 = vmatpush.bf16.msrb.mxu0 %v3073_v58  ;;  %v3029_v55 = vor.u32 %v3416_v42, %v3026_v46  ;;  %v3414_v58 = vld [vmem:[#allocation10 + $0x434] sm:$0xf0] }
 0x1ed   : > { %3655 = vrcp.f32 %v4396_v53  ;;  %v4406_v44 = vpop.f32.mrf.mxu0  ;;  %v1569_v35 = vand.u32 2147483647, %v4396_v53  ;;  %v1571_v40 = vand.u32 2147483648, %v4396_v53  ;;  %2070 = vmatpush.bf16.msrb.mxu1 %v3185_v21  ;;  %2097 = vmatpush.bf16.msrb.mxu3 %v3173_v48  ;;  %vm1565_vm9 = vweird.f32 %v4396_v53 }
 0x1ee   : > { %v1514_v59 = vadd.f32 %v4406_v44, %v1126_v5  ;;  %v3009_v8 = vor.u32 %v3414_v58, %v3008_v56  ;;  %v2994_v5 = vld [vmem:[#allocation10 + $0x418] sm:$0xf0]  ;;  %v3476_v58 = vld [vmem:[#allocation13 + $0x28] sm:$0xff] }
 0x1ef   : > { %2082 = vmatpush.bf16.msrb.mxu2 %v3077_v0  ;;  %v3010_v0 = vld [vmem:[#allocation10 + $0x438] sm:$0xf0]  ;;  %vm1570_vm11 = vcmp.eq.f32.partialorder %v1569_v35, 8.507059e+37  ;;  %v1572_v44 = vor.u32 1.1754944e-38, %v1571_v40  ;;  %v2997_v35 = vor.u32 %v3408_v24, %v2994_v5 }
 0x1f0   : > { %v3654_v30 = vpop.eup %3653  ;;  %2057 = vmatpush.bf16.msrb.mxu0 %v3057_v6  ;;  %v3013_v13 = vor.u32 %v3412_v62, %v3010_v0  ;;  %v1527_v19 = vadd.f32 %v4388_v18, %v1514_v59  ;;  %v2993_v18 = vor.u32 %v3410_v16, %v2992_v15  ;;  %v3475_v0 = vld [vmem:[#allocation13 + $0x20] sm:$0xff] }
 0x1f1   : > { %v4410_v14 = vadd.f32 1.0, %v3654_v30  ;;  %2071 = vmatpush.bf16.msrb.mxu1 %v3169_v41  ;;  %v3136_v30 = vld [vmem:[#allocation10 + $0x528] sm:$0xf]  ;;  %2098 = vmatpush.bf16.msrb.mxu3 %v3157_v60 }
 0x1f3   : > { %v4412_v25 = vpop.eup %3655  ;;  %3657 = vrcp.f32 %v4410_v14  ;;  %v1539_v63 = vpop.f32.mrf.mxu2  ;;  %2083 = vmatpush.bf16.msrb.mxu2 %v3061_v9  ;;  %v3446_v9 = vld [vmem:[#allocation10 + $0x534] sm:$0xf0]  ;;  %v1590_v22 = vand.u32 2147483648, %v4410_v14  ;;  %vm1584_vm13 = vweird.f32 %v4410_v14 }
 0x1f4   : > { %v1561_v28 = vmul.f32 %v4412_v25, %v4396_v53  ;;  %2058 = vmatpush.bf16.msrb.mxu0 %v3041_v29  ;;  %v1540_v52 = vadd.f32 %v1539_v63, %v1127_v26  ;;  %vm1566_vm8 = vweird.f32 %v4412_v25  ;;  %v3440_v63 = vld [vmem:[#allocation10 + $0x50c] sm:$0xf]  ;;  %v3120_v29 = vld [vmem:[#allocation10 + $0x508] sm:$0xf] }
 0x1f5   : > { %v1515_v36 = vpop.f32.mrf.mxu0  ;;  %vm4432_vm10 = vmor %vm1565_vm9, %vm1566_vm8  ;;  %2072 = vmatpush.bf16.msrb.mxu1 %v3153_v2  ;;  %2099 = vmatpush.bf16.msrb.mxu3 %v3141_v23  ;;  %v1591_v48 = vor.u32 1.1754944e-38, %v1590_v22  ;;  %v3121_v43 = vor.u32 %v3442_v50, %v3120_v29  ;;  %v3474_v2 = vld [vmem:[#allocation13 + $0x18] sm:$0xff] }
 0x1f6   : > { %v1562_v20 = vsub.f32 1.0, %v1561_v28  ;;  %v1553_v53 = vadd.f32 %v4391_v39, %v1540_v52  ;;  %v1588_v28 = vand.u32 2147483647, %v4410_v14  ;;  %v3125_v36 = vor.u32 %v3440_v63, %v3122_v27  ;;  %v3478_v52 = vld [vmem:[#allocation13 + $0x38] sm:$0xff] }
 0x1f7   : > { %2084 = vmatpush.bf16.msrb.mxu2 %v3045_v37 }
 0x1f8   : > { %v1563_v54 = vmul.f32 %v4412_v25, %v1562_v20  ;;  %2059 = vmatpush.bf16.msrb.mxu0 %v3025_v45  ;;  %vm1589_vm15 = vcmp.eq.f32.partialorder %v1588_v28, 8.507059e+37 }
 0x1f9   : > { %v4423_v12 = vpop.eup %3657  ;;  %2100 = vmatpush.bf16.msrb.mxu3 %v3125_v36 }
 0x1fa   : > { %v1580_v33 = vmul.f32 %v4423_v12, %v4410_v14  ;;  %v1564_v1 = vadd.f32 %v4412_v25, %v1563_v54  ;;  %vm1585_vm12 = vweird.f32 %v4423_v12  ;;  %v1672_v54 = vld [vmem:[#allocation11 + $0x8] sm:$0xf] }
 0x1fb   : > { %v1541_v7 = vpop.f32.mrf.mxu2  ;;  %2085 = vmatpush.bf16.msrb.mxu2 %v3029_v55  ;;  %vm1586_vm14 = vmor %vm1584_vm13, %vm1585_vm12  ;;  %v1675_v62 = vperm.slane %v1672_v54, 1  ;;  %v1677_v22 = vperm.slane %v1672_v54, 3  ;;  %v1676_v24 = vperm.slane %v1672_v54, 2 }
 0x1fc   : > { %v1581_v10 = vsub.f32 1.0, %v1580_v33  ;;  %v1568_v11 = vsel %vm4432_vm10, %v4412_v25, %v1564_v1  ;;  %v3137_v25 = vor.u32 %v3446_v9, %v3136_v30  ;;  %2060 = vmatpush.bf16.msrb.mxu0 %v3009_v8  ;;  %2101 = vmatmul.bf16.vlgmr.msrb.gmra.mxu3 %v4403_v61  ;;  %v3473_v7 = vld [vmem:[#allocation13 + $0x10] sm:$0xff] }
 0x1fd   : > { %v1573_v21 = vsel %vm1570_vm11, %v1572_v44, %v1568_v11 }
 0x1fe   : > { %v1582_v26 = vmul.f32 %v4423_v12, %v1581_v10  ;;  %v1594_v39 = vmul.f32 %v1573_v21, %v1553_v53  ;;  %2073 = vmatpush.bf16.msrb.mxu1 %v3137_v25  ;;  %v3472_v53 = vld [vmem:[#allocation13 + $0x8] sm:$0xff] }
 0x1ff   : > { %2086 = vmatpush.bf16.msrb.mxu2 %v3013_v13  ;;  %v3471_v13 = vld [vmem:[#allocation13] sm:$0xff] }
 0x200   : > { %v1595_v32 = vadd.f32 %v1594_v39, %v1527_v19  ;;  %v1583_v34 = vadd.f32 %v4423_v12, %v1582_v26  ;;  %2061 = vmatpush.bf16.msrb.mxu0 %v2993_v18 }
 0x202   : > { %3659 = vtanh.f32 %v1595_v32  ;;  %v1587_v37 = vsel %vm1586_vm14, %v4423_v12, %v1583_v34  ;;  %2074 = vmatpush.bf16.msrb.mxu1 %v3121_v43 }
 0x203   : > { %v1592_v14 = vsel %vm1589_vm15, %v1591_v48, %v1587_v37  ;;  %2087 = vmatpush.bf16.msrb.mxu2 %v2997_v35 }
 0x204   : > { %v1597_v31 = vsub.f32 1.0, %v1592_v14  ;;  %v1599_v41 = vmul.f32 %v4334_v38, %v1592_v14  ;;  %v1674_v38 = vperm.slane %v1672_v54, 0 }
 0x205   : > { %2075 = vmatmul.bf16.vlgmr.msrb.gmra.mxu1 %v4403_v61 }
 0x208   : > { %v3660_v20 = vpop.eup %3659 }
 0x209   : > { %v1598_v40 = vmul.f32 %v3660_v20, %v1597_v31 }
 0x20b   : > { %v1600_v42 = vadd.f32 %v1599_v41, %v1598_v40 }
 0x20d   : > { %2980 = vst [vmem:[%s4265_s20 + $0x8] sm:$0xff] %v1600_v42  ;;  %v1604_v46 = vpack.c.bf16 %v1600_v42, %v1600_v42 }
 0x20f   : > { %2010 = vmatmul.bf16.vlgmr.msra.gmra.mxu0 %v1604_v46  ;;  %2036 = vmatmul.bf16.vlgmr.msra.gmra.mxu2 %v1604_v46 }
 0x210   : > { %2221 = vmatpush.bf16.msra.mxu0 %v3478_v52 }
 0x214   : > { %2222 = vmatpush.bf16.msra.mxu0 %v3477_v17 }
 0x218   : > { %2223 = vmatpush.bf16.msra.mxu0 %v3476_v58 }
 0x21c   : > { %2224 = vmatpush.bf16.msra.mxu0 %v3475_v0 }
 0x21f   : > { %2062 = vmatmul.bf16.vlgmr.msrb.gmra.mxu0 %v1604_v46  ;;  %2088 = vmatmul.bf16.vlgmr.msrb.gmra.mxu2 %v1604_v46 }
 0x220   : > { %2225 = vmatpush.bf16.msra.mxu0 %v3474_v2 }
 0x224   : > { %2226 = vmatpush.bf16.msra.mxu0 %v3473_v7 }
 0x228   : > { %2227 = vmatpush.bf16.msra.mxu0 %v3472_v53 }
 0x22c   : > { %2228 = vmatpush.bf16.msra.mxu0 %v3471_v13 }
 0x25c   : > { %v2024_v45 = vpop.f32.mrf.mxu1 }
 0x262   : > { %v2050_v49 = vpop.f32.mrf.mxu3 }
 0x264   : > { %v2026_v47 = vpop.f32.mrf.mxu1 }
 0x26a   : > { %v2052_v51 = vpop.f32.mrf.mxu3 }
 0x27f   : > { %v2102_v61 = vpop.f32.mrf.mxu3 }
 0x282   : > { %v4454_v55 = vpop.f32.mrf.mxu1 }
 0x287   : > { %v2104_v4 = vpop.f32.mrf.mxu3 }
 0x28a   : > { %v2078_v59 = vpop.f32.mrf.mxu1 }
 0x28c   : > { %v2011_v56 = vpop.f32.mrf.mxu0 }
 0x28d   : > { %v2012_v12 = vadd.f32 %v2011_v56, %v1674_v38 }
 0x28f   : > { %v2025_v60 = vadd.f32 %v2024_v45, %v2012_v12 }
 0x291   : > { %v3238_v33 = vmul.f32 -1.442695, %v2025_v60 }
 0x292   : > { %v2037_v1 = vpop.f32.mrf.mxu2 }
 0x293   : > { %3661 = vpow2.f32 %v3238_v33  ;;  %v2038_v3 = vadd.f32 %v2037_v1, %v1675_v62 }
 0x294   : > { %v2013_v6 = vpop.f32.mrf.mxu0 }
 0x295   : > { %v2051_v44 = vadd.f32 %v2050_v49, %v2038_v3 }
 0x297   : > { %v3239_v8 = vmul.f32 -1.442695, %v2051_v44 }
 0x299   : > { %v3662_v30 = vpop.eup %3661  ;;  %3663 = vpow2.f32 %v3239_v8 }
 0x29a   : > { %v2109_v9 = vadd.f32 1.0, %v3662_v30  ;;  %v2039_v10 = vpop.f32.mrf.mxu2 }
 0x29c   : > { %3665 = vrcp.f32 %v2109_v9  ;;  %v2063_v11 = vpop.f32.mrf.mxu0  ;;  %v2121_v39 = vand.u32 2147483648, %v2109_v9  ;;  %v2119_v27 = vand.u32 2147483647, %v2109_v9  ;;  %vm2115_vm1 = vweird.f32 %v2109_v9 }
 0x29d   : > { %v2064_v18 = vadd.f32 %v2063_v11, %v1676_v24 }
 0x29e   : > { %v2122_v32 = vor.u32 1.1754944e-38, %v2121_v39  ;;  %vm2120_vm3 = vcmp.eq.f32.partialorder %v2119_v27, 8.507059e+37 }
 0x29f   : > { %v3664_v15 = vpop.eup %3663  ;;  %v2077_v48 = vadd.f32 %v4454_v55, %v2064_v18 }
 0x2a0   : > { %v2128_v16 = vadd.f32 1.0, %v3664_v15 }
 0x2a2   : > { %v3666_v19 = vpop.eup %3665  ;;  %3667 = vrcp.f32 %v2128_v16  ;;  %v2089_v21 = vpop.f32.mrf.mxu2  ;;  %v2140_v20 = vand.u32 2147483648, %v2128_v16  ;;  %v2138_v40 = vand.u32 2147483647, %v2128_v16  ;;  %vm2134_vm5 = vweird.f32 %v2128_v16 }
 0x2a3   : > { %v2111_v23 = vmul.f32 %v3666_v19, %v2109_v9  ;;  %v2090_v25 = vadd.f32 %v2089_v21, %v1677_v22  ;;  %vm2116_vm0 = vweird.f32 %v3666_v19 }
 0x2a4   : > { %v2065_v5 = vpop.f32.mrf.mxu0  ;;  %vm2117_vm2 = vmor %vm2115_vm1, %vm2116_vm0  ;;  %v2141_v45 = vor.u32 1.1754944e-38, %v2140_v20  ;;  %vm2139_vm7 = vcmp.eq.f32.partialorder %v2138_v40, 8.507059e+37 }
 0x2a5   : > { %v2112_v26 = vsub.f32 1.0, %v2111_v23  ;;  %v2103_v36 = vadd.f32 %v2102_v61, %v2090_v25 }
 0x2a7   : > { %v2113_v63 = vmul.f32 %v3666_v19, %v2112_v26 }
 0x2a8   : > { %v3668_v28 = vpop.eup %3667 }
 0x2a9   : > { %v2130_v29 = vmul.f32 %v3668_v28, %v2128_v16  ;;  %v2114_v50 = vadd.f32 %v3666_v19, %v2113_v63  ;;  %vm2135_vm4 = vweird.f32 %v3668_v28 }
 0x2aa   : > { %v2091_v34 = vpop.f32.mrf.mxu2  ;;  %vm2136_vm6 = vmor %vm2134_vm5, %vm2135_vm4 }
 0x2ab   : > { %v2131_v35 = vsub.f32 1.0, %v2130_v29  ;;  %v2118_v37 = vsel %vm2117_vm2, %v3666_v19, %v2114_v50 }
 0x2ac   : > { %v2123_v43 = vsel %vm2120_vm3, %v2122_v32, %v2118_v37 }
 0x2ad   : > { %v2132_v14 = vmul.f32 %v3668_v28, %v2131_v35  ;;  %v2144_v31 = vmul.f32 %v2123_v43, %v2103_v36 }
 0x2af   : > { %v2145_v41 = vadd.f32 %v2144_v31, %v2077_v48  ;;  %v2133_v42 = vadd.f32 %v3668_v28, %v2132_v14 }
 0x2b1   : > { %3669 = vtanh.f32 %v2145_v41  ;;  %v2137_v46 = vsel %vm2136_vm6, %v3668_v28, %v2133_v42 }
 0x2b2   : > { %v2142_v47 = vsel %vm2139_vm7, %v2141_v45, %v2137_v46 }
 0x2b3   : > { %v2147_v49 = vsub.f32 1.0, %v2142_v47  ;;  %v2149_v54 = vmul.f32 %v4399_v57, %v2142_v47 }
 0x2b7   : > { %v3670_v51 = vpop.eup %3669 }
 0x2b8   : > { %v2148_v52 = vmul.f32 %v3670_v51, %v2147_v49 }
 0x2ba   : > { %v2150_v55 = vadd.f32 %v2149_v54, %v2148_v52 }
 0x2bc   : > { %3240 = vst [vmem:[%s4265_s20 + $0x10] sm:$0xff] %v2150_v55  ;;  %v2152_v17 = vpack.c.bf16 %v2150_v55, %v2150_v55 }
 0x2be   : > { %2229 = vmatmul.bf16.vlgmr.msra.gmra.mxu0 %v2152_v17 }
 0x2bf   : > { %3860 = shalt.err (!%p3857_p3)
}
 0x2c0   : > { %s4015_s20 = smov 128   ;;  %s4016_s19 = smov 256  }
 0x2c1   : > { %s4017_s0 = smov 8   ;;  %s3274_s24 = sshll.u32 %s3985_s14, 1 }
 0x2c2   : > { %3500 = dma.vmem_to_hbm [thread:$0]  (%p4152_p11), %s2269_s22, 384, %s2271_s26, %s2241_s23, %s4015_s20, %s4016_s19, %s4017_s0  }
 0x2c3   : > { %s2251_s25 = sadd.s32 %s3989_s15, %s3274_s24  ;;  %s4621_s9 = sld [smem:[#allocation41_spill]] }
 0x2c4   : > { %s3275_s28 = sshll.u32 %s2251_s25, 3  ;;  %s4623_s27 = sld [smem:[#allocation40_spill]] }
 0x2c5   : > { %s4624_s17 = scalar_lea.vmem [#allocation14], %s4262_s29  ;;  %s4626_s14 = sand.u32 1, %s3965_s10  }
 0x2c6   : > { %s2255_s16 = sshll.u32 %s4624_s17, 4  ;;  %s4625_s2 = smov %s4624_s17  ;;  %s2256_s16 = int_to_ptr.vmem [resolvable:$true] %s2255_s16 }
 0x2c7   : > { %s2236_s15 = scalar_lea.sflag [#allocation7], %s4626_s14 }
 0x2c9   : > { %s4622_s6 = smov %s4621_s9  ;;  %s2253_s21 = scalar_lea.hbm %s4621_s9, %s3275_s28 }
 0x2ca   : > { %v3640_v57 = vld [vmem:[%s4623_s27] ss:$0 sm:$0xff]  ;;  %s2257_s4 = sshll.u32 %s2253_s21, 4  ;;  %s3881_s17 = scalar_lea.hbm %s4622_s6, 128  ;;  %s2258_s4 = int_to_ptr.hbm [resolvable:$true] %s2257_s4 }
 0x2cb   : > { %s3875_s22 = sshra.s32 %s2258_s4, 4  ;;  %s3876_s22 = int_to_ptr.hbm [resolvable:$true] %s3875_s22 }
 0x2cc   : > { %s3877_s26 = scalar_lea.hbm %s3876_s22, 8  ;;  %p3882_p8 = scmp.lt.s32.totalorder %s3876_s22, %s4622_s6 }
 0x2cd   : > { %p3878_p11 = scmp.ne.s32.totalorder %s3876_s22, %s3877_s26  ;;  %p3883_p9 = scmp.lt.s32.totalorder %s3881_s17, %s3877_s26 }
 0x2cf   : > { %p3879_p7 = pnand %p3878_p11, %p4148_p10  ;;  %p3884_p1 = por %p3883_p9, %p3882_p8 }
 0x2d1   : > { %p3880_p4 = pneg %p3879_p7 }
 0x2d3   : > { %p3885_p0 = pnand %p3884_p1, %p3880_p4 }
 0x33b   : > { %v2230_v38 = vpop.f32.mrf.mxu0 }
 0x33c   : > { %v2231_v61 = vadd.f32 %v3640_v57, %v2230_v38 }
 0x33e   : > { %2234 = vst [vmem:[%s4625_s2] sm:$0xff] %v2231_v61 }
 0x33f   : > { %3888 = shalt.err (!%p3885_p0)
}
 0x340   : > { %3499 = dma.vmem_to_hbm [thread:$0]  (%p4148_p10), %s2256_s16, 128, %s2258_s4, %s2236_s15  }
 0x343   : > { %v2232_v56 = vpop.f32.mrf.mxu0 }
 0x344 PF: > { %s4627_s29 = sld [smem:[#allocation24_spill]]  ;;  %p3536_p2 = scmp.ge.s32.totalorder %s4001_s18, 2 }
 0x346   : > { %p3521_p5 = pnand %p3536_p2, %p4156_p12 }
 0x348   : > { %p3522_p6 = pneg %p3521_p5 }
 0x34a   : > { %s2285_s0 = sand.u32 1, %s4627_s29  }
 0x34b   : > { %s2286_s24 = scalar_lea.sflag [#allocation7], %s2285_s0 }
 0x34c   : > { %3952 = dma.done.wait (%p3522_p6), %s2286_s24, 128  }
 0x34d   : > { %3954 = vsyncadd (%p3522_p6), %s2286_s24, 4294967168  ;;  %s4629_s25 = sld [smem:[#allocation25_spill]]  ;;  %p3524_p3 = pnand %p3536_p2, %p4160_p13 }
 0x34f   : > { %p3525_p11 = pneg %p3524_p3 }
 0x353   : > { %s2295_s3 = sand.u32 1, %s4629_s25  }
 0x354   : > { %s2296_s16 = scalar_lea.sflag [#allocation16], %s2295_s3 }
 0x355   : > { %3956 = dma.done.wait (%p3525_p11), %s2296_s16, 384  }
 0x356   : > { %3958 = vsyncadd (%p3525_p11), %s2296_s16, 4294966912  ;;  %s38_s18 = sadd.s32 1, %s4001_s18   ;;  %s4631_s4 = sld [smem:[#allocation34_spill]] }
 0x357   : > { %p35_p10 = scmp.ge.s32.totalorder %s38_s18, 18   ;;  %s4632_s14 = sld [smem:[#allocation26_spill]] }
 0x358   : > { %s4633_s15 = sld [smem:[#allocation27_spill]]  ;;  %s4636_s9 = smov %s3965_s10 }
 0x359   : > { %s4634_s16 = sld [smem:[#allocation32_spill]]  ;;  %s4637_s10 = smov %s3969_s11 }
 0x35a   : > { %s4635_s17 = sld [smem:[#allocation33_spill]]  ;;  %s4638_s11 = smov %s4232_s30 }
 0x35b   : > { %s4639_s0 = smov %s3977_s12  ;;  %s4640_s12 = smov %s3981_s13 }
 0x35c   : > { %s4641_s13 = smov %s4631_s4  ;;  %37 = sbr.rel (!%p35_p10) target bundleno = 26 (0x1a), region = 141 }
 0x361   :  { %2302 = vsyncpa [#allocation6], 1 }
 0x362   :  { %2304 = vsyncpa [#allocation6 + $0x1], 1 }
 0x363   :  { %2305 = vsyncpa [#allocation9], 1 }
 0x364   :  { %2307 = vsyncpa [#allocation9 + $0x1], 1 }
 0x365   :  { %2308 = vsyncpa [#allocation12], 1 }
 0x366   :  { %2309 = vsyncpa [#allocation7], 1 }
 0x367   :  { %2311 = vsyncpa [#allocation7 + $0x1], 1 }
 0x368   :  { %2312 = vsyncpa [#allocation16], 1 }
 0x369   :  { %2314 = vsyncpa [#allocation16 + $0x1], 1 }

</bundles_post_ra>
